<compile_context>
chip_gen: v7x
topology: tpu7x:2x2x1
jax: 0.10.0
libtpu: 0.0.40
codegen_flags: <defaults>
</compile_context>

<pallas_src>
import math

import jax
import jax.numpy as jnp
from jax import lax
from jax.experimental import pallas as pl
from jax.experimental.pallas import tpu as pltpu


def _chamfer_kernel(xa_ref, ya_ref, out_ref, d1_ref, d2_ref):
    """Grid = (batch, N-tiles, M-tiles); batch parallel, tile axes arbitrary.

    xa_ref : (8, TN) augmented pcs1 operand block   (depends on b, i)
    ya_ref : (8, TM) augmented pcs2 operand block   (depends on b, j)
    out_ref: (1, 128) resident per-batch partial-sum block.
    d1_ref : (TN, 1)     running row minima across M tiles (dist1).
    d2_ref : (nj, 1, TM) running column minima across N tiles (dist2).
    """
    i = pl.program_id(1)
    j = pl.program_id(2)
    ni = pl.num_programs(1)
    nj = pl.num_programs(2)

    @pl.when((i == 0) & (j == 0))
    def _():
        out_ref[...] = jnp.zeros_like(out_ref)

    # d[n, m] = |x_n|^2 + |y_m|^2 - 2 x_n . y_m via one K=8 MXU contraction.
    d = lax.dot_general(
        xa_ref[...], ya_ref[...],
        (((0,), (0,)), ((), ())),
        preferred_element_type=jnp.float32)            # (TN, TM)

    # Reduce the tile immediately; only the reduced vectors touch scratch.
    row_min = jnp.min(d, axis=1, keepdims=True)        # (TN, 1)  XLU lane reduce
    col_min = jnp.min(d, axis=0, keepdims=True)        # (1, TM)  sublane reduce

    # dist1: streaming element-wise min of row minima across M tiles.
    @pl.when(j == 0)
    def _():
        d1_ref[...] = row_min

    @pl.when(j > 0)
    def _():
        d1_ref[...] = jnp.minimum(d1_ref[...], row_min)

    # dist2: streaming element-wise min of column minima across N tiles.
    @pl.when(i == 0)
    def _():
        d2_ref[j] = col_min

    @pl.when(i > 0)
    def _():
        d2_ref[j] = jnp.minimum(d2_ref[j], col_min)

    # Finalize dist1 rows of this N tile once all M tiles were seen.
    @pl.when(j == nj - 1)
    def _():
        r = jnp.maximum(d1_ref[...], 0.0)              # clamp cancellation <0
        out_ref[...] += jnp.sum(r, axis=0, keepdims=True)   # (1,1) broadcast

    # Finalize dist2 columns of this M tile once all N tiles were seen.
    @pl.when(i == ni - 1)
    def _():
        c = jnp.maximum(d2_ref[j], 0.0)
        out_ref[...] += jnp.sum(c, axis=1, keepdims=True)


def _round_up(n, m):
    return ((n + m - 1) // m) * m


def _pick_tile(n128, target):
    """Largest multiple of 128 <= target that divides n128 (n128 % 128 == 0)."""
    t = min(max(128, (target // 128) * 128), n128)
    while n128 % t:
        t -= 128
    return t


def cd_loss(pcs1, pcs2, *, tile_n=512, tile_m=512, big=1e30):
    """pcs1, pcs2: [B, N, 3] arrays -> scalar float32 chamfer loss."""
    assert pcs1.shape == pcs2.shape and pcs1.ndim == 3 and pcs1.shape[2] == 3
    B, N, _ = pcs1.shape

    npad = _round_up(N, 128)
    tn = _pick_tile(npad, tile_n)
    tm = _pick_tile(npad, tile_m)
    ni = npad // tn
    nj = npad // tm

    # Lane-dense layout (B, 3, N): last dim maps to the 128 lanes.
    x = jnp.transpose(pcs1.astype(jnp.float32), (0, 2, 1))
    y = jnp.transpose(pcs2.astype(jnp.float32), (0, 2, 1))
    xx = jnp.sum(x * x, axis=1, keepdims=True)          # (B, 1, N)
    yy = jnp.sum(y * y, axis=1, keepdims=True)
    ones = jnp.ones_like(xx)
    zeros3 = jnp.zeros_like(x)

    # Augmented K=8 operands, built once (not per inner grid step):
    #   xa = [-2*x ; 1 ; |x|^2 ; 0 ; 0 ; 0]
    #   ya = [   y ; |y|^2 ; 1 ; 0 ; 0 ; 0]
    # so xa[:, :, n] . ya[:, :, m] = |x_n|^2 + |y_m|^2 - 2 x_n . y_m.
    xa = jnp.concatenate([-2.0 * x, ones, xx, zeros3], axis=1)   # (B, 8, N)
    ya = jnp.concatenate([y, yy, ones, zeros3], axis=1)          # (B, 8, N)

    if npad != N:
        pad = npad - N
        xa = jnp.pad(xa, ((0, 0), (0, 0), (0, pad)))
        ya = jnp.pad(ya, ((0, 0), (0, 0), (0, pad)))
        # Padded points: coords 0, |.|^2 = BIG (and their "ones" row is 0), so
        #   d(valid, pad) = d(pad, valid) = BIG   -> never selected by a min,
        #   d(pad,  pad)  = 0 exactly             -> padded rows/cols add
        # exactly 0 to the sums.  No in-kernel masking required.
        xa = xa.at[:, 4, N:].set(big)
        ya = ya.at[:, 3, N:].set(big)

    partial = pl.pallas_call(
        _chamfer_kernel,
        out_shape=jax.ShapeDtypeStruct((B, 1, 128), jnp.float32),
        grid_spec=pltpu.PrefetchScalarGridSpec(
            num_scalar_prefetch=0,
            grid=(B, ni, nj),
            in_specs=[
                pl.BlockSpec((None, 8, tn), lambda b, i, j: (b, 0, i)),
                pl.BlockSpec((None, 8, tm), lambda b, i, j: (b, 0, j)),
            ],
            out_specs=pl.BlockSpec((None, 1, 128), lambda b, i, j: (b, 0, 0)),
            scratch_shapes=[
                pltpu.VMEM((tn, 1), jnp.float32),        # dist1 running row-min
                pltpu.VMEM((nj, 1, tm), jnp.float32),    # dist2 running col-min
            ],
        ),
        compiler_params=pltpu.CompilerParams(
            dimension_semantics=("parallel", "arbitrary", "arbitrary"),
            vmem_limit_bytes=32 * 1024 * 1024),
    )(xa, ya)

    # partial[b, 0, 0] = sum_n dist1[b, n] + sum_m dist2[b, m]
    # (padded entries contribute exactly 0); normalize by the true count.
    return jnp.sum(partial[:, 0, 0]) / jnp.float32(B * N)


def _cd_loss_ref(pcs1, pcs2):
    """Pure-JAX reference (direct (x - y)^2 form)."""
    d = jnp.sum((pcs1[:, :, None, :] - pcs2[:, None, :, :]) ** 2, axis=-1)
    dist1 = jnp.min(d, axis=2)
    dist2 = jnp.min(d, axis=1)
    return jnp.mean(dist1) + jnp.mean(dist2)


if __name__ == "__main__":
    key = jax.random.PRNGKey(0)
    k1, k2, k3, k4 = jax.random.split(key, 4)

    # Case 1: N a multiple of the tile -> one 512x512 tile per batch element.
    B, N = 2, 512
    pcs1 = jax.random.normal(k1, (B, N, 3), dtype=jnp.float32)
    pcs2 = jax.random.normal(k2, (B, N, 3), dtype=jnp.float32)
    loss = jax.block_until_ready(cd_loss(pcs1, pcs2))
    ref = jax.block_until_ready(_cd_loss_ref(pcs1, pcs2))
    assert jnp.isfinite(loss), "non-finite chamfer loss"
    assert jnp.allclose(loss, ref, rtol=1e-3, atol=1e-4), (loss, ref)

    # Case 2: awkward N -> exercises the pad+mask path and the multi-tile
    # streaming minima / finalizers (grid = (2, 5, 5) with 128-point tiles).
    B2, N2 = 2, 600
    q1 = jax.random.normal(k3, (B2, N2, 3), dtype=jnp.float32)
    q2 = jax.random.normal(k4, (B2, N2, 3), dtype=jnp.float32)
    loss2 = jax.block_until_ready(cd_loss(q1, q2))
    ref2 = jax.block_until_ready(_cd_loss_ref(q1, q2))
    assert jnp.isfinite(loss2), "non-finite chamfer loss (padded case)"
    assert jnp.allclose(loss2, ref2, rtol=1e-3, atol=1e-4), (loss2, ref2)

    print("KERNEL_OK")
</pallas_src>

<mosaic_0001>
module attributes {stable_mosaic.version = 11 : i64} {
  func.func @_chamfer_kernel(%arg0: i32, %arg1: i32, %arg2: i32, %arg3: memref<1x8x512xf32, #tpu.memory_space<vmem>>, %arg4: memref<1x8x512xf32, #tpu.memory_space<vmem>>, %arg5: memref<1x1x128xf32, #tpu.memory_space<vmem>>, %arg6: memref<512x1xf32, #tpu.memory_space<vmem>>, %arg7: memref<1x1x512xf32, #tpu.memory_space<vmem>>) attributes {dimension_semantics = [#tpu.dimension_semantics<parallel>, #tpu.dimension_semantics<arbitrary>, #tpu.dimension_semantics<arbitrary>], iteration_bounds = array<i64: 2, 1, 1>, scalar_prefetch = 0 : i64, scratch_operands = 2 : i64, tpu.core_type = #tpu.core_type<tc>, window_params = [{transform_indices = @transform_0, window_bounds = array<i64: 1, 8, 512>}, {transform_indices = @transform_1, window_bounds = array<i64: 1, 8, 512>}, {transform_indices = @transform_2, window_bounds = array<i64: 1, 1, 128>}]} {
    %c0_i32 = arith.constant 0 : i32
    %0 = arith.cmpi eq, %arg1, %c0_i32 : i32
    %c0_i32_0 = arith.constant 0 : i32
    %1 = arith.cmpi eq, %arg2, %c0_i32_0 : i32
    %2 = arith.andi %0, %1 : i1
    %3 = arith.extui %2 : i1 to i32
    %c0_i32_1 = arith.constant 0 : i32
    %4 = arith.cmpi ne, %3, %c0_i32_1 : i32
    scf.if %4 {
      %cst_21 = arith.constant 0.000000e+00 : f32
      %32 = vector.broadcast %cst_21 : f32 to vector<1x128xf32>
      %c0_22 = arith.constant 0 : index
      %c0_23 = arith.constant 0 : index
      %c0_24 = arith.constant 0 : index
      %33 = vector.load %arg5[%c0_22, %c0_23, %c0_24] : memref<1x1x128xf32, #tpu.memory_space<vmem>>, vector<1x1x128xf32>
      %34 = vector.shape_cast %33 : vector<1x1x128xf32> to vector<1x128xf32>
      %35 = vector.shape_cast %32 : vector<1x128xf32> to vector<1x1x128xf32>
      tpu.vector_store %arg5[%c0_22, %c0_23, %c0_24], %35 {strides = array<i32>} : memref<1x1x128xf32, #tpu.memory_space<vmem>>, vector<1x1x128xf32>,
    } else {
    }
    %c0 = arith.constant 0 : index
    %c0_2 = arith.constant 0 : index
    %c0_3 = arith.constant 0 : index
    %5 = vector.load %arg3[%c0, %c0_2, %c0_3] : memref<1x8x512xf32, #tpu.memory_space<vmem>>, vector<1x8x512xf32>
    %6 = vector.shape_cast %5 : vector<1x8x512xf32> to vector<8x512xf32>
    %c0_4 = arith.constant 0 : index
    %c0_5 = arith.constant 0 : index
    %c0_6 = arith.constant 0 : index
    %7 = vector.load %arg4[%c0_4, %c0_5, %c0_6] : memref<1x8x512xf32, #tpu.memory_space<vmem>>, vector<1x8x512xf32>
    %8 = vector.shape_cast %7 : vector<1x8x512xf32> to vector<8x512xf32>
    %cst = arith.constant dense<0.000000e+00> : vector<512x512xf32>
    %9 = tpu.matmul %6, %8, %cst {dimension_numbers = #tpu.dot_dimension_numbers<[0], [0], [1], [1], [0, 1, 1, 1], [], []>} : vector<8x512xf32>, vector<8x512xf32>, vector<512x512xf32> -> vector<512x512xf32>
    %cst_7 = arith.constant dense<0x7F800000> : vector<512xf32>
    %10 = vector.multi_reduction <minimumf>, %9, %cst_7 [1] : vector<512x512xf32> to vector<512xf32>
    %11 = vector.shape_cast %10 : vector<512xf32> to vector<512x1xf32>
    %cst_8 = arith.constant dense<0x7F800000> : vector<512xf32>
    %12 = vector.multi_reduction <minimumf>, %9, %cst_8 [0] : vector<512x512xf32> to vector<512xf32>
    %13 = vector.shape_cast %12 : vector<512xf32> to vector<1x512xf32>
    %c0_i32_9 = arith.constant 0 : i32
    %14 = arith.cmpi eq, %arg2, %c0_i32_9 : i32
    %15 = arith.extui %14 : i1 to i32
    %c0_i32_10 = arith.constant 0 : i32
    %16 = arith.cmpi ne, %15, %c0_i32_10 : i32
    scf.if %16 {
      %c0_21 = arith.constant 0 : index
      %c0_22 = arith.constant 0 : index
      %32 = vector.load %arg6[%c0_21, %c0_22] : memref<512x1xf32, #tpu.memory_space<vmem>>, vector<512x1xf32>
      tpu.vector_store %arg6[%c0_21, %c0_22], %11 {strides = array<i32>} : memref<512x1xf32, #tpu.memory_space<vmem>>, vector<512x1xf32>,
    } else {
    }
    %c0_i32_11 = arith.constant 0 : i32
    %17 = arith.cmpi sgt, %arg2, %c0_i32_11 : i32
    %18 = arith.extui %17 : i1 to i32
    %c0_i32_12 = arith.constant 0 : i32
    %19 = arith.cmpi ne, %18, %c0_i32_12 : i32
    scf.if %19 {
      %c0_21 = arith.constant 0 : index
      %c0_22 = arith.constant 0 : index
      %32 = vector.load %arg6[%c0_21, %c0_22] : memref<512x1xf32, #tpu.memory_space<vmem>>, vector<512x1xf32>
      %33 = arith.minimumf %32, %11 : vector<512x1xf32>
      %c0_23 = arith.constant 0 : index
      %c0_24 = arith.constant 0 : index
      %34 = vector.load %arg6[%c0_23, %c0_24] : memref<512x1xf32, #tpu.memory_space<vmem>>, vector<512x1xf32>
      tpu.vector_store %arg6[%c0_23, %c0_24], %33 {strides = array<i32>} : memref<512x1xf32, #tpu.memory_space<vmem>>, vector<512x1xf32>,
    } else {
    }
    %c0_i32_13 = arith.constant 0 : i32
    %20 = arith.cmpi eq, %arg1, %c0_i32_13 : i32
    %21 = arith.extui %20 : i1 to i32
    %c0_i32_14 = arith.constant 0 : i32
    %22 = arith.cmpi ne, %21, %c0_i32_14 : i32
    scf.if %22 {
      %32 = arith.index_cast %arg2 : i32 to index
      %c0_21 = arith.constant 0 : index
      %c0_22 = arith.constant 0 : index
      %33 = vector.load %arg7[%32, %c0_21, %c0_22] : memref<1x1x512xf32, #tpu.memory_space<vmem>>, vector<1x1x512xf32>
      %34 = vector.shape_cast %33 : vector<1x1x512xf32> to vector<1x512xf32>
      %35 = vector.shape_cast %13 : vector<1x512xf32> to vector<1x1x512xf32>
      tpu.vector_store %arg7[%32, %c0_21, %c0_22], %35 {strides = array<i32>} : memref<1x1x512xf32, #tpu.memory_space<vmem>>, vector<1x1x512xf32>,
    } else {
    }
    %c0_i32_15 = arith.constant 0 : i32
    %23 = arith.cmpi sgt, %arg1, %c0_i32_15 : i32
    %24 = arith.extui %23 : i1 to i32
    %c0_i32_16 = arith.constant 0 : i32
    %25 = arith.cmpi ne, %24, %c0_i32_16 : i32
    scf.if %25 {
      %32 = arith.index_cast %arg2 : i32 to index
      %c0_21 = arith.constant 0 : index
      %c0_22 = arith.constant 0 : index
      %33 = vector.load %arg7[%32, %c0_21, %c0_22] : memref<1x1x512xf32, #tpu.memory_space<vmem>>, vector<1x1x512xf32>
      %34 = vector.shape_cast %33 : vector<1x1x512xf32> to vector<1x512xf32>
      %35 = arith.minimumf %34, %13 : vector<1x512xf32>
      %36 = arith.index_cast %arg2 : i32 to index
      %c0_23 = arith.constant 0 : index
      %c0_24 = arith.constant 0 : index
      %37 = vector.load %arg7[%36, %c0_23, %c0_24] : memref<1x1x512xf32, #tpu.memory_space<vmem>>, vector<1x1x512xf32>
      %38 = vector.shape_cast %37 : vector<1x1x512xf32> to vector<1x512xf32>
      %39 = vector.shape_cast %35 : vector<1x512xf32> to vector<1x1x512xf32>
      tpu.vector_store %arg7[%36, %c0_23, %c0_24], %39 {strides = array<i32>} : memref<1x1x512xf32, #tpu.memory_space<vmem>>, vector<1x1x512xf32>,
    } else {
    }
    %c0_i32_17 = arith.constant 0 : i32
    %26 = arith.cmpi eq, %arg2, %c0_i32_17 : i32
    %27 = arith.extui %26 : i1 to i32
    %c0_i32_18 = arith.constant 0 : i32
    %28 = arith.cmpi ne, %27, %c0_i32_18 : i32
    scf.if %28 {
      %c0_21 = arith.constant 0 : index
      %c0_22 = arith.constant 0 : index
      %32 = vector.load %arg6[%c0_21, %c0_22] : memref<512x1xf32, #tpu.memory_space<vmem>>, vector<512x1xf32>
      %cst_23 = arith.constant 0.000000e+00 : f32
      %33 = vector.broadcast %cst_23 : f32 to vector<512x1xf32>
      %34 = arith.maximumf %32, %33 : vector<512x1xf32>
      %c0_24 = arith.constant 0 : index
      %c0_25 = arith.constant 0 : index
      %c0_26 = arith.constant 0 : index
      %35 = vector.load %arg5[%c0_24, %c0_25, %c0_26] : memref<1x1x128xf32, #tpu.memory_space<vmem>>, vector<1x1x128xf32>
      %36 = vector.shape_cast %35 : vector<1x1x128xf32> to vector<1x128xf32>
      %cst_27 = arith.constant dense<0.000000e+00> : vector<1xf32>
      %37 = vector.multi_reduction <add>, %34, %cst_27 [0] : vector<512x1xf32> to vector<1xf32>
      %38 = vector.shape_cast %37 : vector<1xf32> to vector<1x1xf32>
      %39 = vector.broadcast %38 : vector<1x1xf32> to vector<1x128xf32>
      %40 = arith.addf %36, %39 : vector<1x128xf32>
      %c0_28 = arith.constant 0 : index
      %c0_29 = arith.constant 0 : index
      %c0_30 = arith.constant 0 : index
      %41 = vector.load %arg5[%c0_28, %c0_29, %c0_30] : memref<1x1x128xf32, #tpu.memory_space<vmem>>, vector<1x1x128xf32>
      %42 = vector.shape_cast %41 : vector<1x1x128xf32> to vector<1x128xf32>
      %43 = vector.shape_cast %40 : vector<1x128xf32> to vector<1x1x128xf32>
      tpu.vector_store %arg5[%c0_28, %c0_29, %c0_30], %43 {strides = array<i32>} : memref<1x1x128xf32, #tpu.memory_space<vmem>>, vector<1x1x128xf32>,
    } else {
    }
    %c0_i32_19 = arith.constant 0 : i32
    %29 = arith.cmpi eq, %arg1, %c0_i32_19 : i32
    %30 = arith.extui %29 : i1 to i32
    %c0_i32_20 = arith.constant 0 : i32
    %31 = arith.cmpi ne, %30, %c0_i32_20 : i32
    scf.if %31 {
      %32 = arith.index_cast %arg2 : i32 to index
      %c0_21 = arith.constant 0 : index
      %c0_22 = arith.constant 0 : index
      %33 = vector.load %arg7[%32, %c0_21, %c0_22] : memref<1x1x512xf32, #tpu.memory_space<vmem>>, vector<1x1x512xf32>
      %34 = vector.shape_cast %33 : vector<1x1x512xf32> to vector<1x512xf32>
      %cst_23 = arith.constant 0.000000e+00 : f32
      %35 = vector.broadcast %cst_23 : f32 to vector<1x512xf32>
      %36 = arith.maximumf %34, %35 : vector<1x512xf32>
      %c0_24 = arith.constant 0 : index
      %c0_25 = arith.constant 0 : index
      %c0_26 = arith.constant 0 : index
      %37 = vector.load %arg5[%c0_24, %c0_25, %c0_26] : memref<1x1x128xf32, #tpu.memory_space<vmem>>, vector<1x1x128xf32>
      %38 = vector.shape_cast %37 : vector<1x1x128xf32> to vector<1x128xf32>
      %cst_27 = arith.constant dense<0.000000e+00> : vector<1xf32>
      %39 = vector.multi_reduction <add>, %36, %cst_27 [1] : vector<1x512xf32> to vector<1xf32>
      %40 = vector.shape_cast %39 : vector<1xf32> to vector<1x1xf32>
      %41 = vector.broadcast %40 : vector<1x1xf32> to vector<1x128xf32>
      %42 = arith.addf %38, %41 : vector<1x128xf32>
      %c0_28 = arith.constant 0 : index
      %c0_29 = arith.constant 0 : index
      %c0_30 = arith.constant 0 : index
      %43 = vector.load %arg5[%c0_28, %c0_29, %c0_30] : memref<1x1x128xf32, #tpu.memory_space<vmem>>, vector<1x1x128xf32>
      %44 = vector.shape_cast %43 : vector<1x1x128xf32> to vector<1x128xf32>
      %45 = vector.shape_cast %42 : vector<1x128xf32> to vector<1x1x128xf32>
      tpu.vector_store %arg5[%c0_28, %c0_29, %c0_30], %45 {strides = array<i32>} : memref<1x1x128xf32, #tpu.memory_space<vmem>>, vector<1x1x128xf32>,
    } else {
    }
    return
  }
  func.func @transform_0(%arg0: i32, %arg1: i32, %arg2: i32) -> (i32, i32, i32) {
    %c0_i32 = arith.constant 0 : i32
    %c0_i32_0 = arith.constant 0 : i32
    return %arg0, %c0_i32, %arg1 : i32, i32, i32
  }
  func.func @transform_1(%arg0: i32, %arg1: i32, %arg2: i32) -> (i32, i32, i32) {
    %c0_i32 = arith.constant 0 : i32
    %c0_i32_0 = arith.constant 0 : i32
    return %arg0, %c0_i32, %arg2 : i32, i32, i32
  }
  func.func @transform_2(%arg0: i32, %arg1: i32, %arg2: i32) -> (i32, i32, i32) {
    %c0_i32 = arith.constant 0 : i32
    %c0_i32_0 = arith.constant 0 : i32
    %c0_i32_1 = arith.constant 0 : i32
    return %arg0, %c0_i32, %c0_i32_0 : i32, i32, i32
  }
}

</mosaic_0001>

<bundles_post_ra>
// kernel: tpu_custom_call.1
= control target key start
LH: loop header
LB: loop body
LE: loop exit
PB: predicated region body
PF: predicated region fallthrough
CT: control target
= control target key end

     0   :  { %7 = vsyncpa [#allocation5], 0  ;;  %s3905_s0 = inlined_call_operand.hbm [shape: f32[2,8,512], index: 0, kind: input, shape index: {}]   ;;  %s3906_s1 = inlined_call_operand.hbm [shape: f32[2,8,512], index: 1, kind: input, shape index: {}]   ;;  %s3907_s2 = inlined_call_operand.hbm [shape: f32[2,1,128], index: 2, kind: output, shape index: {}]  }
   0x1   :  { %9 = vsyncpa [#allocation5 + $0x1], 0 }
   0x2   :  { %10 = vsyncpa [#allocation8], 0 }
   0x3   :  { %12 = vsyncpa [#allocation8 + $0x1], 0 }
   0x4   :  { %13 = vsyncpa [#allocation6], 0 }
   0x5   :  { %15 = vsyncpa [#allocation6 + $0x1], 0  ;;  %s3227_s9 = smov 0   ;;  %s3229_s10 = smov 0  }
   0x6   :  { %s3231_s11 = smov 0   ;;  %s3233_s12 = smov 0  }
   0x7   :  { %s3235_s13 = smov 0   ;;  %s3237_s14 = smov 0  }
   0x8 LB: > { %s2841_s15 = sadd.s32 4294967295, %s3204_s14   ;;  %s2842_s16 = sadd.s32 4294967294, %s3204_s14   ;;  %s3204_s14 = sphi %s3237_s14, %s21_s14   ;;  %s3200_s13 = sphi %s3235_s13, %s3927_s13   ;;  %s3196_s12 = sphi %s3233_s12, %s3926_s12   ;;  %s3192_s11 = sphi %s3231_s11, %s3925_s11   ;;  %s3188_s10 = sphi %s3229_s10, %s3924_s10   ;;  %s3184_s9 = sphi %s3227_s9, %s3923_s9  }
   0x9   : > { %s40_s17 = sadd.s32 1, %s3200_s13  ;;  %s49_s18 = sadd.s32 1, %s3192_s11 }
   0xa   : > { %p42_p0 = scmp.ge.s32.totalorder %s40_s17, 2  ;;  %p56_p1 = scmp.ne.s32.totalorder %s3192_s11, %s3188_s10 }
   0xb   : > { %p57_p2 = scmp.eq.s32.totalorder %s3204_s14, 0  ;;  %p62_p3 = scmp.ne.s32.totalorder %s3188_s10, %s3184_s9 }
   0xc   : > { %s3929_s17 = smov (%p42_p0, %s40_s17), 0  ;;  %p63_p5 = scmp.eq.s32.totalorder %s2841_s15, 0 }
   0xd   : > { %p3268_p4 = por %p57_p2, %p56_p1  ;;  %s44_s20 = ssub.s32 %s3200_s13, %s3929_s17 }
   0xe   : > { %p114_p6 = scmp.eq.s32.totalorder %s2841_s15, 1  ;;  %p47_p7 = scmp.eq.s32.totalorder %s44_s20, 0 }
   0xf   : > { %p3274_p8 = por %p63_p5, %p62_p3  ;;  %p120_p10 = scmp.eq.s32.totalorder %s2842_s16, 1 }
  0x10   : > { %p3278_p9 = por %p114_p6, %p56_p1  ;;  %p3004_p13 = scmp.lt.s32.totalorder %s3204_s14, 2 }
  0x11   : > { %s3911_s21 = scalar_select %p3274_p8, 1, 0 }
  0x12   : > { %s3912_s22 = scalar_select %p3278_p9, 1, 0 }
  0x13   : > { %s3283_s23 = scalar_select %p47_p7, %s3192_s11, %s49_s18  }
  0x14   : > { %p3285_p11 = por %p120_p10, %p62_p3  ;;  %s3292_s25 = sand.u32 1, %s3192_s11  }
  0x15   : > { %s2845_s26 = sshll.u32 %s3292_s25, 5  ;;  %s2985_s27 = sshll.u32 %s3200_s13, 9 }
  0x16   : > { %s3913_s24 = scalar_select %p3285_p11, 1, 0 }
  0x17   : > { %s3301_s30 = scalar_lea.hbm %s3905_s0, %s2985_s27  ;;  %s144_s3 = scalar_lea.vmem [#allocation4], %s2845_s26 }
  0x18   : > { %s154_s4 = sshll.u32 %s144_s3, 4  ;;  %p3309_p0 = pnand %p3004_p13, %p3268_p4  ;;  %s3305_s4 = int_to_ptr.vmem [resolvable:$true] %s154_s4 }
  0x19   : > { %s141_s6 = scalar_lea.sflag [#allocation5], %s3292_s25  ;;  %s3058_s7 = scalar_lea.hbm %s3301_s30, 512 }
  0x1a   : > { %p3059_p3 = scmp.ne.s32.totalorder %s3301_s30, %s3058_s7  ;;  %p3060_p5 = pneg %p3309_p0 }
  0x1b   : > { %s3063_s16 = scalar_lea.hbm %s3905_s0, 1024  ;;  %p3064_p4 = scmp.lt.u32.totalorder %s3301_s30, %s3905_s0 }
  0x1c   : > { %p3061_p6 = pnand %p3060_p5, %p3059_p3  ;;  %p3065_p10 = scmp.lt.u32.totalorder %s3063_s16, %s3058_s7 }
  0x1d   : > { %p3067_p12 = scmp.lt.u32.totalorder %s3058_s7, %s3301_s30 }
  0x1e   : > { %p3062_p7 = pneg %p3061_p6  ;;  %p3066_p13 = por %p3065_p10, %p3064_p4 }
  0x20   : > { %p3068_p1 = por %p3067_p12, %p3066_p13 }
  0x22   : > { %p3069_p2 = pnand %p3068_p1, %p3062_p7 }
  0x24   : > { %3072 = shalt.err (!%p3069_p2)
}
  0x25   : > { %s3073_s20 = scalar_lea.vmem %s3305_s4, 512  ;;  %s3206_s28 = smov [#allocation4]  }
  0x26   : > { %p3074_p3 = scmp.ne.s32.totalorder %s3305_s4, %s3073_s20  ;;  %s3078_s29 = sshll.u32 %s3206_s28, 4  ;;  %s3079_s29 = int_to_ptr.vmem [resolvable:$false] %s3078_s29 }
  0x27   : > { %s3080_s3 = scalar_lea.vmem %s3079_s29, 1024  ;;  %p3081_p9 = scmp.lt.s32.totalorder %s3305_s4, %s3079_s29 }
  0x28   : > { %p3076_p6 = pnand %p3074_p3, %p3060_p5  ;;  %p3082_p4 = scmp.lt.s32.totalorder %s3080_s3, %s3073_s20 }
  0x2a   : > { %p3077_p11 = pneg %p3076_p6  ;;  %p3083_p10 = por %p3082_p4, %p3081_p9 }
  0x2c   : > { %p3084_p12 = pnand %p3083_p10, %p3077_p11 }
  0x2e   : > { %3087 = shalt.err (!%p3084_p12)
}
  0x2f   : > { %2996 = dma.hbm_to_vmem [thread:$0]  (!%p3309_p0), %s3301_s30, 512, %s3305_s4, %s141_s6  }
  0x30   : > { %p3915_p1 = scmp.lt.s32.totalorder %s3204_s14, 3  ;;  %p3916_p2 = scmp.ge.s32.totalorder %s3204_s14, 1 }
  0x31   : > { %s3354_s16 = scalar_lea.hbm %s3906_s1, %s2985_s27  ;;  %s165_s18 = scalar_lea.vmem [#allocation7], %s2845_s26 }
  0x32   : > { %p3345_p7 = pnand %p3916_p2, %p3915_p1  ;;  %s175_s19 = sshll.u32 %s165_s18, 4  ;;  %s176_s19 = int_to_ptr.vmem [resolvable:$true] %s175_s19 }
  0x33   : > { %s162_s30 = scalar_lea.sflag [#allocation8], %s3292_s25  ;;  %s3088_s4 = scalar_lea.hbm %s3354_s16, 512 }
  0x34   : > { %s3917_s7 = scalar_select %p3345_p7, 1, 0 }
  0x35   : > { %p3089_p9 = scmp.ne.s32.totalorder %s3354_s16, %s3088_s4  ;;  %s3093_s27 = scalar_lea.hbm %s3906_s1, 1024 }
  0x36   : > { %p3094_p3 = scmp.lt.u32.totalorder %s3354_s16, %s3906_s1  ;;  %p3095_p6 = scmp.lt.u32.totalorder %s3093_s27, %s3088_s4 }
  0x37   : > { %p3091_p11 = pnand %p3089_p9, %p3060_p5  ;;  %p3097_p10 = scmp.lt.u32.totalorder %s3088_s4, %s3354_s16 }
  0x38   : > { %p3096_p4 = por %p3095_p6, %p3094_p3 }
  0x39   : > { %p3092_p13 = pneg %p3091_p11 }
  0x3a   : > { %p3098_p12 = por %p3097_p10, %p3096_p4 }
  0x3c   : > { %p3099_p1 = pnand %p3098_p12, %p3092_p13 }
  0x3e   : > { %3102 = shalt.err (!%p3099_p1)
}
  0x3f   : > { %s3103_s25 = scalar_lea.vmem %s176_s19, 512  ;;  %s3207_s26 = smov [#allocation7]  }
  0x40   : > { %p3104_p2 = scmp.ne.s32.totalorder %s176_s19, %s3103_s25  ;;  %s3108_s3 = sshll.u32 %s3207_s26, 4  ;;  %s3109_s3 = int_to_ptr.vmem [resolvable:$false] %s3108_s3 }
  0x41   : > { %s3110_s8 = scalar_lea.vmem %s3109_s3, 1024  ;;  %p3111_p8 = scmp.lt.s32.totalorder %s176_s19, %s3109_s3 }
  0x42   : > { %p3106_p9 = pnand %p3104_p2, %p3060_p5  ;;  %p3112_p7 = scmp.lt.s32.totalorder %s3110_s8, %s3103_s25 }
  0x44   : > { %p3107_p11 = pneg %p3106_p9  ;;  %p3113_p3 = por %p3112_p7, %p3111_p8 }
  0x46   : > { %p3114_p6 = pnand %p3113_p3, %p3107_p11 }
  0x48   : > { %3117 = shalt.err (!%p3114_p6)
}
  0x49   : > { %2999 = dma.hbm_to_vmem [thread:$0]  (!%p3309_p0), %s3354_s16, 512, %s176_s19, %s162_s30  }
  0x4a   : > { %p3918_p13 = scmp.ne.s32.totalorder %s3917_s7, 0 }
  0x4b   : > { %s3381_s15 = sand.u32 (!%p3918_p13), 1, %s3188_s10   ;;  %p3919_p5 = scmp.ne.s32.totalorder (!%p3918_p13), %s3911_s21, 0 }
  0x4c   : > { %184 = sbr.rel (%p3918_p13) target bundleno = 1009 (0x3f1), region = 28  ;;  %s2852_s18 = sshll.u32 (!%p3918_p13), %s3381_s15, 5 }
  0x4d   : > { %s187_s4 = scalar_lea.sflag (!%p3918_p13), [#allocation5], %s3381_s15  ;;  %s190_s6 = scalar_lea.vmem (!%p3918_p13), [#allocation4], %s2852_s18 }
  0x53   : > { %3171 = dma.done.wait (%p3919_p5), %s187_s4, 512  }
  0x54   : > { %3173 = vsyncadd (%p3919_p5), %s187_s4, 4294966784  ;;  %s196_s5 = scalar_lea.sflag [#allocation8], %s3381_s15  ;;  %s199_s16 = scalar_lea.vmem [#allocation7], %s2852_s18 }
  0x55   : > { %3175 = dma.done.wait (%p3919_p5), %s196_s5, 512  }
  0x56   : > { %3177 = vsyncadd (%p3919_p5), %s196_s5, 4294966784  ;;  %v3208_v0 = vmov 0.0   ;;  %v233_v1 = vld [vmem:[%s190_s6] sm:$0xff]  ;;  %v238_v2 = vld [vmem:[%s199_s16 + $0x8] sm:$0xff]  ;;  %vm369_vm0 = vcmask 64512   ;;  %vm2059_vm1 = vcmask 7168  }
  0x57   : > { %626 = vmatprep.mubr.f32.mxu0 %v3208_v0  ;;  %1075 = vmatprep.mubr.f32.mxu1 %v3208_v0  ;;  %v240_v3 = vld [vmem:[%s199_s16 + $0x18] sm:$0xff]  ;;  %v237_v4 = vld [vmem:[%s199_s16] sm:$0xff]  ;;  %v239_v5 = vld [vmem:[%s199_s16 + $0x10] sm:$0xff]  ;;  %vm2704_vm3 = vcmask 1040384   ;;  %s3770_s21 = scalar_lea.vmem [#allocation9], %s3381_s15  ;;  %s2982_s7 = sshll.u32 %s3196_s12, 4 }
  0x58   : > { %241 = vxpose.xlu0.b32.start.end [1/1] (short) %v233_v1, 128  ;;  %562 = vmatprep.subr.mxu0 %v238_v2  ;;  %v235_v6 = vld [vmem:[%s190_s6 + $0x10] sm:$0xff]  ;;  %v234_v7 = vld [vmem:[%s190_s6 + $0x8] sm:$0xff]  ;;  %v236_v8 = vld [vmem:[%s190_s6 + $0x18] sm:$0xff]  ;;  %232 = vst [vmem:[%s3770_s21] sm:$0x1] %v3208_v0  ;;  %s2729_s19 = sshll.u32 %s3770_s21, 4  ;;  %s3855_s27 = scalar_lea.hbm %s3907_s2, %s2982_s7  ;;  %s3857_s19 = int_to_ptr.vmem [resolvable:$true] %s2729_s19 }
  0x59   : > { %1011 = vmatprep.subr.mxu1 %v240_v3  ;;  %563 = vmatpush1.msra.mxu0 %v237_v4  ;;  %s2717_s28 = scalar_lea.sflag [#allocation6], %s3381_s15  ;;  %s3118_s29 = scalar_lea.vmem %s3857_s19, 16 }
  0x5a   : > { %1012 = vmatpush1.msra.mxu1 %v239_v5  ;;  %305 = vxpose.xlu1.b32.start.end [1/1] (short) %v235_v6, 128  ;;  %p3119_p8 = scmp.ne.s32.totalorder %s3857_s19, %s3118_s29  ;;  %p3920_p0 = scmp.ne.s32.totalorder %s3912_s22, 0 }
  0x5b   : > { %s3211_s12 = smov [#allocation9]  }
  0x5c   : > { %p3120_p7 = pnand %p3119_p8, %p3920_p0  ;;  %s3122_s25 = sshll.u32 %s3211_s12, 4  ;;  %s3123_s25 = int_to_ptr.vmem [resolvable:$false] %s3122_s25 }
  0x5d   : > { %s3124_s26 = scalar_lea.vmem %s3123_s25, 32  ;;  %p3125_p10 = scmp.lt.s32.totalorder %s3857_s19, %s3123_s25 }
  0x5e   : > { %p3121_p4 = pneg %p3120_p7  ;;  %p3126_p12 = scmp.lt.s32.totalorder %s3124_s26, %s3118_s29 }
  0x60   : > { %p3127_p1 = por %p3126_p12, %p3125_p10 }
  0x62   : > { %p3128_p2 = pnand %p3127_p1, %p3121_p4 }
  0x95   : > { %273 = vxpose.xlu0.b32.start.end [1/1] (short) %v234_v7, 128 }
  0x97   : > { %337 = vxpose.xlu1.b32.start.end [1/1] (short) %v236_v8, 128 }
  0xd8   : > { %v257_v9 = vpop.trf.xlu0 }
  0xd9   : > { %2854 = vmatmul.mubr.msk.f32.vlgmr.msra.gmra.mrb[0].mxu0 %vm369_vm0, %v257_v9  ;;  %2918 = vmatmul.mubr.msk.f32.vlgmr.msra.gmra.mrb[0].mxu1 %vm369_vm0, %v257_v9 }
  0xda   : > { %632 = vmatprep.mubr.f32.mxu0 %v3208_v0  ;;  %1081 = vmatprep.mubr.f32.mxu1 %v3208_v0  ;;  %v3452_v23 = vpop.trf.xlu1 }
  0xdc   : > { %v258_v10 = vpop.trf.xlu0 }
  0xdd   : > { %2855 = vmatmul.mubr.msk.f32.gmra.mrb[2].mxu0 %vm369_vm0, %v258_v10  ;;  %2919 = vmatmul.mubr.msk.f32.gmra.mrb[2].mxu1 %vm369_vm0, %v258_v10 }
  0xde   : > { %638 = vmatprep.mubr.f32.mxu0 %v3208_v0  ;;  %1087 = vmatprep.mubr.f32.mxu1 %v3208_v0  ;;  %v3460_v26 = vpop.trf.xlu1 }
  0xe0   : > { %v259_v11 = vpop.trf.xlu0 }
  0xe1   : > { %2856 = vmatmul.mubr.msk.f32.gmra.mrb[4].mxu0 %vm369_vm0, %v259_v11  ;;  %2920 = vmatmul.mubr.msk.f32.gmra.mrb[4].mxu1 %vm369_vm0, %v259_v11 }
  0xe2   : > { %644 = vmatprep.mubr.f32.mxu0 %v3208_v0  ;;  %1093 = vmatprep.mubr.f32.mxu1 %v3208_v0  ;;  %v3468_v28 = vpop.trf.xlu1 }
  0xe4   : > { %v260_v12 = vpop.trf.xlu0 }
  0xe5   : > { %2857 = vmatmul.mubr.msk.f32.gmra.mrb[6].mxu0 %vm369_vm0, %v260_v12  ;;  %2921 = vmatmul.mubr.msk.f32.gmra.mrb[6].mxu1 %vm369_vm0, %v260_v12 }
  0xe6   : > { %650 = vmatprep.mubr.f32.mxu0 %v3208_v0  ;;  %1099 = vmatprep.mubr.f32.mxu1 %v3208_v0  ;;  %v3476_v31 = vpop.trf.xlu1 }
  0xe8   : > { %v261_v13 = vpop.trf.xlu0 }
  0xe9   : > { %2858 = vmatmul.mubr.msk.f32.gmra.mrb[8].mxu0 %vm369_vm0, %v261_v13  ;;  %2922 = vmatmul.mubr.msk.f32.gmra.mrb[8].mxu1 %vm369_vm0, %v261_v13 }
  0xea   : > { %656 = vmatprep.mubr.f32.mxu0 %v3208_v0  ;;  %1105 = vmatprep.mubr.f32.mxu1 %v3208_v0  ;;  %v3484_v33 = vpop.trf.xlu1 }
  0xec   : > { %v262_v14 = vpop.trf.xlu0 }
  0xed   : > { %2859 = vmatmul.mubr.msk.f32.gmra.mrb[10].mxu0 %vm369_vm0, %v262_v14  ;;  %2923 = vmatmul.mubr.msk.f32.gmra.mrb[10].mxu1 %vm369_vm0, %v262_v14 }
  0xee   : > { %662 = vmatprep.mubr.f32.mxu0 %v3208_v0  ;;  %1111 = vmatprep.mubr.f32.mxu1 %v3208_v0  ;;  %v3492_v36 = vpop.trf.xlu1 }
  0xf0   : > { %v263_v15 = vpop.trf.xlu0 }
  0xf1   : > { %2860 = vmatmul.mubr.msk.f32.gmra.mrb[12].mxu0 %vm369_vm0, %v263_v15  ;;  %2924 = vmatmul.mubr.msk.f32.gmra.mrb[12].mxu1 %vm369_vm0, %v263_v15 }
  0xf2   : > { %668 = vmatprep.mubr.f32.mxu0 %v3208_v0  ;;  %1117 = vmatprep.mubr.f32.mxu1 %v3208_v0  ;;  %v3500_v38 = vpop.trf.xlu1 }
  0xf4   : > { %v264_v16 = vpop.trf.xlu0 }
  0xf5   : > { %2861 = vmatmul.mubr.msk.f32.gmra.mrb[14].mxu0 %vm369_vm0, %v264_v16  ;;  %2925 = vmatmul.mubr.msk.f32.gmra.mrb[14].mxu1 %vm369_vm0, %v264_v16 }
  0xf6   : > { %674 = vmatprep.mubr.f32.mxu0 %v3208_v0  ;;  %1123 = vmatprep.mubr.f32.mxu1 %v3208_v0  ;;  %v3508_v41 = vpop.trf.xlu1 }
  0xf8   : > { %v265_v17 = vpop.trf.xlu0 }
  0xf9   : > { %2862 = vmatmul.mubr.msk.f32.gmra.mrb[16].mxu0 %vm369_vm0, %v265_v17  ;;  %2926 = vmatmul.mubr.msk.f32.gmra.mrb[16].mxu1 %vm369_vm0, %v265_v17 }
  0xfa   : > { %680 = vmatprep.mubr.f32.mxu0 %v3208_v0  ;;  %1129 = vmatprep.mubr.f32.mxu1 %v3208_v0  ;;  %v3516_v43 = vpop.trf.xlu1 }
  0xfc   : > { %v266_v18 = vpop.trf.xlu0 }
  0xfd   : > { %2863 = vmatmul.mubr.msk.f32.gmra.mrb[18].mxu0 %vm369_vm0, %v266_v18  ;;  %2927 = vmatmul.mubr.msk.f32.gmra.mrb[18].mxu1 %vm369_vm0, %v266_v18 }
  0xfe   : > { %686 = vmatprep.mubr.f32.mxu0 %v3208_v0  ;;  %1135 = vmatprep.mubr.f32.mxu1 %v3208_v0  ;;  %v3524_v46 = vpop.trf.xlu1 }
 0x100   : > { %v267_v19 = vpop.trf.xlu0 }
 0x101   : > { %2864 = vmatmul.mubr.msk.f32.gmra.mrb[20].mxu0 %vm369_vm0, %v267_v19  ;;  %2928 = vmatmul.mubr.msk.f32.gmra.mrb[20].mxu1 %vm369_vm0, %v267_v19 }
 0x102   : > { %692 = vmatprep.mubr.f32.mxu0 %v3208_v0  ;;  %1141 = vmatprep.mubr.f32.mxu1 %v3208_v0  ;;  %v3532_v48 = vpop.trf.xlu1 }
 0x104   : > { %v268_v20 = vpop.trf.xlu0 }
 0x105   : > { %2865 = vmatmul.mubr.msk.f32.gmra.mrb[22].mxu0 %vm369_vm0, %v268_v20  ;;  %2929 = vmatmul.mubr.msk.f32.gmra.mrb[22].mxu1 %vm369_vm0, %v268_v20 }
 0x106   : > { %698 = vmatprep.mubr.f32.mxu0 %v3208_v0  ;;  %1147 = vmatprep.mubr.f32.mxu1 %v3208_v0  ;;  %v332_v51 = vpop.trf.xlu1 }
 0x108   : > { %v269_v21 = vpop.trf.xlu0 }
 0x109   : > { %2866 = vmatmul.mubr.msk.f32.gmra.mrb[24].mxu0 %vm369_vm0, %v269_v21  ;;  %2930 = vmatmul.mubr.msk.f32.gmra.mrb[24].mxu1 %vm369_vm0, %v269_v21 }
 0x10a   : > { %704 = vmatprep.mubr.f32.mxu0 %v3208_v0  ;;  %1153 = vmatprep.mubr.f32.mxu1 %v3208_v0  ;;  %v333_v53 = vpop.trf.xlu1 }
 0x10c   : > { %v270_v22 = vpop.trf.xlu0 }
 0x10d   : > { %2867 = vmatmul.mubr.msk.f32.gmra.mrb[26].mxu0 %vm369_vm0, %v270_v22  ;;  %2931 = vmatmul.mubr.msk.f32.gmra.mrb[26].mxu1 %vm369_vm0, %v270_v22 }
 0x10e   : > { %710 = vmatprep.mubr.f32.mxu0 %v3208_v0  ;;  %1159 = vmatprep.mubr.f32.mxu1 %v3208_v0  ;;  %v334_v54 = vpop.trf.xlu1 }
 0x110   : > { %v271_v24 = vpop.trf.xlu0 }
 0x111   : > { %2868 = vmatmul.mubr.msk.f32.gmra.mrb[28].mxu0 %vm369_vm0, %v271_v24  ;;  %2932 = vmatmul.mubr.msk.f32.gmra.mrb[28].mxu1 %vm369_vm0, %v271_v24 }
 0x112   : > { %716 = vmatprep.mubr.f32.mxu0 %v3208_v0  ;;  %1165 = vmatprep.mubr.f32.mxu1 %v3208_v0  ;;  %v335_v55 = vpop.trf.xlu1 }
 0x114   : > { %v272_v25 = vpop.trf.xlu0 }
 0x115   : > { %2869 = vmatmul.mubr.msk.f32.gmra.mrb[30].mxu0 %vm369_vm0, %v272_v25  ;;  %2933 = vmatmul.mubr.msk.f32.gmra.mrb[30].mxu1 %vm369_vm0, %v272_v25 }
 0x116   : > { %722 = vmatprep.mubr.f32.mxu0 %v3208_v0  ;;  %1171 = vmatprep.mubr.f32.mxu1 %v3208_v0  ;;  %v336_v56 = vpop.trf.xlu1 }
 0x118   : > { %v289_v27 = vpop.trf.xlu0 }
 0x119   : > { %2870 = vmatmul.mubr.msk.f32.gmra.mrb[32].mxu0 %vm369_vm0, %v289_v27  ;;  %2934 = vmatmul.mubr.msk.f32.gmra.mrb[32].mxu1 %vm369_vm0, %v289_v27 }
 0x11a   : > { %728 = vmatprep.mubr.f32.mxu0 %v3208_v0  ;;  %1177 = vmatprep.mubr.f32.mxu1 %v3208_v0  ;;  %v353_v57 = vpop.trf.xlu1 }
 0x11c   : > { %v290_v29 = vpop.trf.xlu0 }
 0x11d   : > { %2871 = vmatmul.mubr.msk.f32.gmra.mrb[34].mxu0 %vm369_vm0, %v290_v29  ;;  %2935 = vmatmul.mubr.msk.f32.gmra.mrb[34].mxu1 %vm369_vm0, %v290_v29 }
 0x11e   : > { %734 = vmatprep.mubr.f32.mxu0 %v3208_v0  ;;  %1183 = vmatprep.mubr.f32.mxu1 %v3208_v0  ;;  %v354_v58 = vpop.trf.xlu1 }
 0x120   : > { %v291_v30 = vpop.trf.xlu0 }
 0x121   : > { %2872 = vmatmul.mubr.msk.f32.gmra.mrb[36].mxu0 %vm369_vm0, %v291_v30  ;;  %2936 = vmatmul.mubr.msk.f32.gmra.mrb[36].mxu1 %vm369_vm0, %v291_v30 }
 0x122   : > { %740 = vmatprep.mubr.f32.mxu0 %v3208_v0  ;;  %1189 = vmatprep.mubr.f32.mxu1 %v3208_v0  ;;  %v355_v59 = vpop.trf.xlu1 }
 0x124   : > { %v292_v32 = vpop.trf.xlu0 }
 0x125   : > { %2873 = vmatmul.mubr.msk.f32.gmra.mrb[38].mxu0 %vm369_vm0, %v292_v32  ;;  %2937 = vmatmul.mubr.msk.f32.gmra.mrb[38].mxu1 %vm369_vm0, %v292_v32 }
 0x126   : > { %746 = vmatprep.mubr.f32.mxu0 %v3208_v0  ;;  %1195 = vmatprep.mubr.f32.mxu1 %v3208_v0  ;;  %v356_v60 = vpop.trf.xlu1 }
 0x128   : > { %v293_v34 = vpop.trf.xlu0 }
 0x129   : > { %2874 = vmatmul.mubr.msk.f32.gmra.mrb[40].mxu0 %vm369_vm0, %v293_v34  ;;  %2938 = vmatmul.mubr.msk.f32.gmra.mrb[40].mxu1 %vm369_vm0, %v293_v34 }
 0x12a   : > { %752 = vmatprep.mubr.f32.mxu0 %v3208_v0  ;;  %1201 = vmatprep.mubr.f32.mxu1 %v3208_v0  ;;  %v357_v61 = vpop.trf.xlu1 }
 0x12c   : > { %v294_v35 = vpop.trf.xlu0 }
 0x12d   : > { %2875 = vmatmul.mubr.msk.f32.gmra.mrb[42].mxu0 %vm369_vm0, %v294_v35  ;;  %2939 = vmatmul.mubr.msk.f32.gmra.mrb[42].mxu1 %vm369_vm0, %v294_v35 }
 0x12e   : > { %758 = vmatprep.mubr.f32.mxu0 %v3208_v0  ;;  %1207 = vmatprep.mubr.f32.mxu1 %v3208_v0  ;;  %v358_v62 = vpop.trf.xlu1 }
 0x130   : > { %v295_v37 = vpop.trf.xlu0 }
 0x131   : > { %2876 = vmatmul.mubr.msk.f32.gmra.mrb[44].mxu0 %vm369_vm0, %v295_v37  ;;  %2940 = vmatmul.mubr.msk.f32.gmra.mrb[44].mxu1 %vm369_vm0, %v295_v37 }
 0x132   : > { %764 = vmatprep.mubr.f32.mxu0 %v3208_v0  ;;  %1213 = vmatprep.mubr.f32.mxu1 %v3208_v0  ;;  %v359_v63 = vpop.trf.xlu1 }
 0x134   : > { %v296_v39 = vpop.trf.xlu0 }
 0x135   : > { %2877 = vmatmul.mubr.msk.f32.gmra.mrb[46].mxu0 %vm369_vm0, %v296_v39  ;;  %2941 = vmatmul.mubr.msk.f32.gmra.mrb[46].mxu1 %vm369_vm0, %v296_v39 }
 0x136   : > { %770 = vmatprep.mubr.f32.mxu0 %v3208_v0  ;;  %1219 = vmatprep.mubr.f32.mxu1 %v3208_v0  ;;  %v360_v1 = vpop.trf.xlu1 }
 0x138   : > { %v297_v40 = vpop.trf.xlu0 }
 0x139   : > { %2878 = vmatmul.mubr.msk.f32.gmra.mrb[48].mxu0 %vm369_vm0, %v297_v40  ;;  %2942 = vmatmul.mubr.msk.f32.gmra.mrb[48].mxu1 %vm369_vm0, %v297_v40 }
 0x13a   : > { %776 = vmatprep.mubr.f32.mxu0 %v3208_v0  ;;  %1225 = vmatprep.mubr.f32.mxu1 %v3208_v0  ;;  %v3640_v2 = vpop.trf.xlu1 }
 0x13c   : > { %v298_v42 = vpop.trf.xlu0 }
 0x13d   : > { %2879 = vmatmul.mubr.msk.f32.gmra.mrb[50].mxu0 %vm369_vm0, %v298_v42  ;;  %2943 = vmatmul.mubr.msk.f32.gmra.mrb[50].mxu1 %vm369_vm0, %v298_v42 }
 0x13e   : > { %782 = vmatprep.mubr.f32.mxu0 %v3208_v0  ;;  %1231 = vmatprep.mubr.f32.mxu1 %v3208_v0  ;;  %v3648_v3 = vpop.trf.xlu1 }
 0x140   : > { %v299_v44 = vpop.trf.xlu0 }
 0x141   : > { %2880 = vmatmul.mubr.msk.f32.gmra.mrb[52].mxu0 %vm369_vm0, %v299_v44  ;;  %2944 = vmatmul.mubr.msk.f32.gmra.mrb[52].mxu1 %vm369_vm0, %v299_v44 }
 0x142   : > { %788 = vmatprep.mubr.f32.mxu0 %v3208_v0  ;;  %1237 = vmatprep.mubr.f32.mxu1 %v3208_v0  ;;  %v3656_v4 = vpop.trf.xlu1 }
 0x144   : > { %v300_v45 = vpop.trf.xlu0 }
 0x145   : > { %2881 = vmatmul.mubr.msk.f32.gmra.mrb[54].mxu0 %vm369_vm0, %v300_v45  ;;  %2945 = vmatmul.mubr.msk.f32.gmra.mrb[54].mxu1 %vm369_vm0, %v300_v45 }
 0x146   : > { %794 = vmatprep.mubr.f32.mxu0 %v3208_v0  ;;  %1243 = vmatprep.mubr.f32.mxu1 %v3208_v0  ;;  %v3666_v21 = vpop.trf.xlu1 }
 0x148   : > { %v301_v47 = vpop.trf.xlu0 }
 0x149   : > { %2882 = vmatmul.mubr.msk.f32.gmra.mrb[56].mxu0 %vm369_vm0, %v301_v47  ;;  %2946 = vmatmul.mubr.msk.f32.gmra.mrb[56].mxu1 %vm369_vm0, %v301_v47 }
 0x14a   : > { %800 = vmatprep.mubr.f32.mxu0 %v3208_v0  ;;  %1249 = vmatprep.mubr.f32.mxu1 %v3208_v0  ;;  %v365_v44 = vpop.trf.xlu1 }
 0x14c   : > { %v302_v49 = vpop.trf.xlu0 }
 0x14d   : > { %2883 = vmatmul.mubr.msk.f32.gmra.mrb[58].mxu0 %vm369_vm0, %v302_v49  ;;  %2947 = vmatmul.mubr.msk.f32.gmra.mrb[58].mxu1 %vm369_vm0, %v302_v49 }
 0x14e   : > { %806 = vmatprep.mubr.f32.mxu0 %v3208_v0  ;;  %1255 = vmatprep.mubr.f32.mxu1 %v3208_v0 }
 0x150   : > { %v303_v50 = vpop.trf.xlu0 }
 0x151   : > { %2884 = vmatmul.mubr.msk.f32.gmra.mrb[60].mxu0 %vm369_vm0, %v303_v50  ;;  %2948 = vmatmul.mubr.msk.f32.gmra.mrb[60].mxu1 %vm369_vm0, %v303_v50 }
 0x152   : > { %812 = vmatprep.mubr.f32.mxu0 %v3208_v0  ;;  %1261 = vmatprep.mubr.f32.mxu1 %v3208_v0 }
 0x154   : > { %v304_v52 = vpop.trf.xlu0 }
 0x155   : > { %2885 = vmatmul.mubr.msk.f32.gmra.mrb[62].mxu0 %vm369_vm0, %v304_v52  ;;  %2949 = vmatmul.mubr.msk.f32.gmra.mrb[62].mxu1 %vm369_vm0, %v304_v52 }
 0x156   : > { %818 = vmatprep.mubr.f32.mxu0 %v3208_v0  ;;  %1267 = vmatprep.mubr.f32.mxu1 %v3208_v0 }
 0x159   : > { %2886 = vmatmul.mubr.msk.f32.gmra.mrb[64].mxu0 %vm369_vm0, %v3452_v23  ;;  %2950 = vmatmul.mubr.msk.f32.gmra.mrb[64].mxu1 %vm369_vm0, %v3452_v23 }
 0x15a   : > { %824 = vmatprep.mubr.f32.mxu0 %v3208_v0  ;;  %1273 = vmatprep.mubr.f32.mxu1 %v3208_v0 }
 0x15d   : > { %2887 = vmatmul.mubr.msk.f32.gmra.mrb[66].mxu0 %vm369_vm0, %v3460_v26  ;;  %2951 = vmatmul.mubr.msk.f32.gmra.mrb[66].mxu1 %vm369_vm0, %v3460_v26 }
 0x15e   : > { %830 = vmatprep.mubr.f32.mxu0 %v3208_v0  ;;  %1279 = vmatprep.mubr.f32.mxu1 %v3208_v0 }
 0x161   : > { %2888 = vmatmul.mubr.msk.f32.gmra.mrb[68].mxu0 %vm369_vm0, %v3468_v28  ;;  %2952 = vmatmul.mubr.msk.f32.gmra.mrb[68].mxu1 %vm369_vm0, %v3468_v28 }
 0x162   : > { %836 = vmatprep.mubr.f32.mxu0 %v3208_v0  ;;  %1285 = vmatprep.mubr.f32.mxu1 %v3208_v0 }
 0x165   : > { %2889 = vmatmul.mubr.msk.f32.gmra.mrb[70].mxu0 %vm369_vm0, %v3476_v31  ;;  %2953 = vmatmul.mubr.msk.f32.gmra.mrb[70].mxu1 %vm369_vm0, %v3476_v31 }
 0x166   : > { %842 = vmatprep.mubr.f32.mxu0 %v3208_v0  ;;  %1291 = vmatprep.mubr.f32.mxu1 %v3208_v0 }
 0x169   : > { %2890 = vmatmul.mubr.msk.f32.gmra.mrb[72].mxu0 %vm369_vm0, %v3484_v33  ;;  %2954 = vmatmul.mubr.msk.f32.gmra.mrb[72].mxu1 %vm369_vm0, %v3484_v33 }
 0x16a   : > { %848 = vmatprep.mubr.f32.mxu0 %v3208_v0  ;;  %1297 = vmatprep.mubr.f32.mxu1 %v3208_v0 }
 0x16d   : > { %2891 = vmatmul.mubr.msk.f32.gmra.mrb[74].mxu0 %vm369_vm0, %v3492_v36  ;;  %2955 = vmatmul.mubr.msk.f32.gmra.mrb[74].mxu1 %vm369_vm0, %v3492_v36 }
 0x16e   : > { %854 = vmatprep.mubr.f32.mxu0 %v3208_v0  ;;  %1303 = vmatprep.mubr.f32.mxu1 %v3208_v0 }
 0x171   : > { %2892 = vmatmul.mubr.msk.f32.gmra.mrb[76].mxu0 %vm369_vm0, %v3500_v38  ;;  %2956 = vmatmul.mubr.msk.f32.gmra.mrb[76].mxu1 %vm369_vm0, %v3500_v38 }
 0x172   : > { %860 = vmatprep.mubr.f32.mxu0 %v3208_v0  ;;  %1309 = vmatprep.mubr.f32.mxu1 %v3208_v0 }
 0x175   : > { %2893 = vmatmul.mubr.msk.f32.gmra.mrb[78].mxu0 %vm369_vm0, %v3508_v41  ;;  %2957 = vmatmul.mubr.msk.f32.gmra.mrb[78].mxu1 %vm369_vm0, %v3508_v41 }
 0x176   : > { %866 = vmatprep.mubr.f32.mxu0 %v3208_v0  ;;  %1315 = vmatprep.mubr.f32.mxu1 %v3208_v0 }
 0x179   : > { %2894 = vmatmul.mubr.msk.f32.gmra.mrb[80].mxu0 %vm369_vm0, %v3516_v43  ;;  %2958 = vmatmul.mubr.msk.f32.gmra.mrb[80].mxu1 %vm369_vm0, %v3516_v43 }
 0x17a   : > { %872 = vmatprep.mubr.f32.mxu0 %v3208_v0  ;;  %1321 = vmatprep.mubr.f32.mxu1 %v3208_v0 }
 0x17d   : > { %2895 = vmatmul.mubr.msk.f32.gmra.mrb[82].mxu0 %vm369_vm0, %v3524_v46  ;;  %2959 = vmatmul.mubr.msk.f32.gmra.mrb[82].mxu1 %vm369_vm0, %v3524_v46 }
 0x17e   : > { %878 = vmatprep.mubr.f32.mxu0 %v3208_v0  ;;  %1327 = vmatprep.mubr.f32.mxu1 %v3208_v0 }
 0x181   : > { %2896 = vmatmul.mubr.msk.f32.gmra.mrb[84].mxu0 %vm369_vm0, %v3532_v48  ;;  %2960 = vmatmul.mubr.msk.f32.gmra.mrb[84].mxu1 %vm369_vm0, %v3532_v48 }
 0x182   : > { %884 = vmatprep.mubr.f32.mxu0 %v3208_v0  ;;  %1333 = vmatprep.mubr.f32.mxu1 %v3208_v0 }
 0x185   : > { %2897 = vmatmul.mubr.msk.f32.gmra.mrb[86].mxu0 %vm369_vm0, %v332_v51  ;;  %2961 = vmatmul.mubr.msk.f32.gmra.mrb[86].mxu1 %vm369_vm0, %v332_v51 }
 0x186   : > { %890 = vmatprep.mubr.f32.mxu0 %v3208_v0  ;;  %1339 = vmatprep.mubr.f32.mxu1 %v3208_v0 }
 0x189   : > { %2898 = vmatmul.mubr.msk.f32.gmra.mrb[88].mxu0 %vm369_vm0, %v333_v53  ;;  %2962 = vmatmul.mubr.msk.f32.gmra.mrb[88].mxu1 %vm369_vm0, %v333_v53 }
 0x18a   : > { %896 = vmatprep.mubr.f32.mxu0 %v3208_v0  ;;  %1345 = vmatprep.mubr.f32.mxu1 %v3208_v0 }
 0x18d   : > { %2899 = vmatmul.mubr.msk.f32.gmra.mrb[90].mxu0 %vm369_vm0, %v334_v54  ;;  %2963 = vmatmul.mubr.msk.f32.gmra.mrb[90].mxu1 %vm369_vm0, %v334_v54 }
 0x18e   : > { %902 = vmatprep.mubr.f32.mxu0 %v3208_v0  ;;  %1351 = vmatprep.mubr.f32.mxu1 %v3208_v0 }
 0x191   : > { %2900 = vmatmul.mubr.msk.f32.gmra.mrb[92].mxu0 %vm369_vm0, %v335_v55  ;;  %2964 = vmatmul.mubr.msk.f32.gmra.mrb[92].mxu1 %vm369_vm0, %v335_v55 }
 0x192   : > { %908 = vmatprep.mubr.f32.mxu0 %v3208_v0  ;;  %1357 = vmatprep.mubr.f32.mxu1 %v3208_v0 }
 0x195   : > { %2901 = vmatmul.mubr.msk.f32.gmra.mrb[94].mxu0 %vm369_vm0, %v336_v56  ;;  %2965 = vmatmul.mubr.msk.f32.gmra.mrb[94].mxu1 %vm369_vm0, %v336_v56 }
 0x196   : > { %914 = vmatprep.mubr.f32.mxu0 %v3208_v0  ;;  %1363 = vmatprep.mubr.f32.mxu1 %v3208_v0 }
 0x199   : > { %2902 = vmatmul.mubr.msk.f32.gmra.mrb[96].mxu0 %vm369_vm0, %v353_v57  ;;  %2966 = vmatmul.mubr.msk.f32.gmra.mrb[96].mxu1 %vm369_vm0, %v353_v57 }
 0x19a   : > { %920 = vmatprep.mubr.f32.mxu0 %v3208_v0  ;;  %1369 = vmatprep.mubr.f32.mxu1 %v3208_v0 }
 0x19d   : > { %2903 = vmatmul.mubr.msk.f32.gmra.mrb[98].mxu0 %vm369_vm0, %v354_v58  ;;  %2967 = vmatmul.mubr.msk.f32.gmra.mrb[98].mxu1 %vm369_vm0, %v354_v58 }
 0x19e   : > { %926 = vmatprep.mubr.f32.mxu0 %v3208_v0  ;;  %1375 = vmatprep.mubr.f32.mxu1 %v3208_v0 }
 0x1a1   : > { %2904 = vmatmul.mubr.msk.f32.gmra.mrb[100].mxu0 %vm369_vm0, %v355_v59  ;;  %2968 = vmatmul.mubr.msk.f32.gmra.mrb[100].mxu1 %vm369_vm0, %v355_v59 }
 0x1a2   : > { %932 = vmatprep.mubr.f32.mxu0 %v3208_v0  ;;  %1381 = vmatprep.mubr.f32.mxu1 %v3208_v0 }
 0x1a5   : > { %2905 = vmatmul.mubr.msk.f32.gmra.mrb[102].mxu0 %vm369_vm0, %v356_v60  ;;  %2969 = vmatmul.mubr.msk.f32.gmra.mrb[102].mxu1 %vm369_vm0, %v356_v60 }
 0x1a6   : > { %938 = vmatprep.mubr.f32.mxu0 %v3208_v0  ;;  %1387 = vmatprep.mubr.f32.mxu1 %v3208_v0 }
 0x1a9   : > { %2906 = vmatmul.mubr.msk.f32.gmra.mrb[104].mxu0 %vm369_vm0, %v357_v61  ;;  %2970 = vmatmul.mubr.msk.f32.gmra.mrb[104].mxu1 %vm369_vm0, %v357_v61 }
 0x1aa   : > { %944 = vmatprep.mubr.f32.mxu0 %v3208_v0  ;;  %1393 = vmatprep.mubr.f32.mxu1 %v3208_v0 }
 0x1ac   : > { %v628_v5 = vpop.f32.mrb[0].mxu0  ;;  %v1077_v6 = vpop.f32.mrb[0].mxu1 }
 0x1ad   : > { %v630_v7 = vpop.f32.mrb[1].mxu0  ;;  %2907 = vmatmul.mubr.msk.f32.gmra.mrb[106].mxu0 %vm369_vm0, %v358_v62  ;;  %v1079_v8 = vpop.f32.mrb[1].mxu1  ;;  %2971 = vmatmul.mubr.msk.f32.gmra.mrb[106].mxu1 %vm369_vm0, %v358_v62 }
 0x1ae   : > { %v1460_v9 = vmin.f32 %v628_v5, %v630_v7  ;;  %950 = vmatprep.mubr.f32.mxu0 %v3208_v0  ;;  %1399 = vmatprep.mubr.f32.mxu1 %v3208_v0 }
 0x1b0   : > { %v634_v10 = vpop.f32.mrb[2].mxu0  ;;  %v1083_v11 = vpop.f32.mrb[2].mxu1  ;;  %v1461_v12 = vmin.f32 %v1460_v9, %v1077_v6 }
 0x1b1   : > { %v1780_v13 = vmin.f32 %v628_v5, %v634_v10  ;;  %v1918_v14 = vmin.f32 %v1077_v6, %v1083_v11  ;;  %v636_v15 = vpop.f32.mrb[3].mxu0  ;;  %2908 = vmatmul.mubr.msk.f32.gmra.mrb[108].mxu0 %vm369_vm0, %v359_v63  ;;  %v1085_v16 = vpop.f32.mrb[3].mxu1  ;;  %2972 = vmatmul.mubr.msk.f32.gmra.mrb[108].mxu1 %vm369_vm0, %v359_v63 }
 0x1b2   : > { %v1465_v17 = vmin.f32 %v634_v10, %v636_v15  ;;  %v1849_v18 = vmin.f32 %v630_v7, %v636_v15  ;;  %v1987_v19 = vmin.f32 %v1079_v8, %v1085_v16  ;;  %v1462_v20 = vmin.f32 %v1461_v12, %v1079_v8  ;;  %956 = vmatprep.mubr.f32.mxu0 %v3208_v0  ;;  %v366_v5 = vpop.trf.xlu1 }
 0x1b3   : > { %1405 = vmatprep.mubr.f32.mxu1 %v3208_v0 }
 0x1b4   : > { %1463 = vmin.xlane.f32.xlu0 %v1462_v20  ;;  %v640_v22 = vpop.f32.mrb[4].mxu0  ;;  %v1089_v23 = vpop.f32.mrb[4].mxu1  ;;  %v1466_v24 = vmin.f32 %v1465_v17, %v1083_v11 }
 0x1b5   : > { %v1781_v25 = vmin.f32 %v1780_v13, %v640_v22  ;;  %v1919_v26 = vmin.f32 %v1918_v14, %v1089_v23  ;;  %v642_v27 = vpop.f32.mrb[5].mxu0  ;;  %2909 = vmatmul.mubr.msk.f32.gmra.mrb[110].mxu0 %vm369_vm0, %v360_v1  ;;  %v1091_v28 = vpop.f32.mrb[5].mxu1  ;;  %2973 = vmatmul.mubr.msk.f32.gmra.mrb[110].mxu1 %vm369_vm0, %v360_v1 }
 0x1b6   : > { %v1470_v29 = vmin.f32 %v640_v22, %v642_v27  ;;  %v1850_v30 = vmin.f32 %v1849_v18, %v642_v27  ;;  %v1988_v31 = vmin.f32 %v1987_v19, %v1091_v28  ;;  %v1467_v32 = vmin.f32 %v1466_v24, %v1085_v16  ;;  %962 = vmatprep.mubr.f32.mxu0 %v3208_v0  ;;  %v367_v27 = vpop.trf.xlu1 }
 0x1b7   : > { %1411 = vmatprep.mubr.f32.mxu1 %v3208_v0 }
 0x1b8   : > { %1468 = vmin.xlane.f32.xlu1 %v1467_v32  ;;  %v646_v33 = vpop.f32.mrb[6].mxu0  ;;  %v1095_v34 = vpop.f32.mrb[6].mxu1  ;;  %v1471_v35 = vmin.f32 %v1470_v29, %v1089_v23 }
 0x1b9   : > { %v1782_v36 = vmin.f32 %v1781_v25, %v646_v33  ;;  %v1920_v37 = vmin.f32 %v1919_v26, %v1095_v34  ;;  %v648_v38 = vpop.f32.mrb[7].mxu0  ;;  %2910 = vmatmul.mubr.msk.f32.gmra.mrb[112].mxu0 %vm369_vm0, %v3640_v2  ;;  %v1097_v39 = vpop.f32.mrb[7].mxu1  ;;  %2974 = vmatmul.mubr.msk.f32.gmra.mrb[112].mxu1 %vm369_vm0, %v3640_v2 }
 0x1ba   : > { %v1475_v40 = vmin.f32 %v646_v33, %v648_v38  ;;  %v1851_v41 = vmin.f32 %v1850_v30, %v648_v38  ;;  %v1989_v42 = vmin.f32 %v1988_v31, %v1097_v39  ;;  %v1472_v43 = vmin.f32 %v1471_v35, %v1091_v28  ;;  %968 = vmatprep.mubr.f32.mxu0 %v3208_v0 }
 0x1bb   : > { %1417 = vmatprep.mubr.f32.mxu1 %v3208_v0 }
 0x1bc   : > { %1473 = vmin.xlane.f32.xlu1 %v1472_v43  ;;  %v652_v45 = vpop.f32.mrb[8].mxu0  ;;  %v1101_v46 = vpop.f32.mrb[8].mxu1  ;;  %v1476_v47 = vmin.f32 %v1475_v40, %v1095_v34 }
 0x1bd   : > { %v1783_v48 = vmin.f32 %v1782_v36, %v652_v45  ;;  %v1921_v49 = vmin.f32 %v1920_v37, %v1101_v46  ;;  %v654_v50 = vpop.f32.mrb[9].mxu0  ;;  %2911 = vmatmul.mubr.msk.f32.gmra.mrb[114].mxu0 %vm369_vm0, %v3648_v3  ;;  %v1103_v51 = vpop.f32.mrb[9].mxu1  ;;  %2975 = vmatmul.mubr.msk.f32.gmra.mrb[114].mxu1 %vm369_vm0, %v3648_v3 }
 0x1be   : > { %v1480_v52 = vmin.f32 %v652_v45, %v654_v50  ;;  %v1852_v53 = vmin.f32 %v1851_v41, %v654_v50  ;;  %v1990_v54 = vmin.f32 %v1989_v42, %v1103_v51  ;;  %v1477_v55 = vmin.f32 %v1476_v47, %v1097_v39  ;;  %974 = vmatprep.mubr.f32.mxu0 %v3208_v0 }
 0x1bf   : > { %1423 = vmatprep.mubr.f32.mxu1 %v3208_v0 }
 0x1c0   : > { %1478 = vmin.xlane.f32.xlu1 %v1477_v55  ;;  %v658_v56 = vpop.f32.mrb[10].mxu0  ;;  %v1107_v57 = vpop.f32.mrb[10].mxu1  ;;  %v1481_v58 = vmin.f32 %v1480_v52, %v1101_v46 }
 0x1c1   : > { %v1784_v59 = vmin.f32 %v1783_v48, %v658_v56  ;;  %v1922_v60 = vmin.f32 %v1921_v49, %v1107_v57  ;;  %v660_v61 = vpop.f32.mrb[11].mxu0  ;;  %2912 = vmatmul.mubr.msk.f32.gmra.mrb[116].mxu0 %vm369_vm0, %v3656_v4  ;;  %v1109_v62 = vpop.f32.mrb[11].mxu1  ;;  %2976 = vmatmul.mubr.msk.f32.gmra.mrb[116].mxu1 %vm369_vm0, %v3656_v4 }
 0x1c2   : > { %v1485_v63 = vmin.f32 %v658_v56, %v660_v61  ;;  %v1853_v1 = vmin.f32 %v1852_v53, %v660_v61  ;;  %v1991_v2 = vmin.f32 %v1990_v54, %v1109_v62  ;;  %v1482_v3 = vmin.f32 %v1481_v58, %v1103_v51  ;;  %980 = vmatprep.mubr.f32.mxu0 %v3208_v0  ;;  %v368_v49 = vpop.trf.xlu1 }
 0x1c3   : > { %1429 = vmatprep.mubr.f32.mxu1 %v3208_v0 }
 0x1c4   : > { %1483 = vmin.xlane.f32.xlu0 %v1482_v3  ;;  %v664_v6 = vpop.f32.mrb[12].mxu0  ;;  %v1113_v7 = vpop.f32.mrb[12].mxu1  ;;  %v1486_v8 = vmin.f32 %v1485_v63, %v1107_v57 }
 0x1c5   : > { %v1785_v9 = vmin.f32 %v1784_v59, %v664_v6  ;;  %v1923_v10 = vmin.f32 %v1922_v60, %v1113_v7  ;;  %v666_v11 = vpop.f32.mrb[13].mxu0  ;;  %2913 = vmatmul.mubr.msk.f32.gmra.mrb[118].mxu0 %vm369_vm0, %v3666_v21  ;;  %v1115_v4 = vpop.f32.mrb[13].mxu1  ;;  %2977 = vmatmul.mubr.msk.f32.gmra.mrb[118].mxu1 %vm369_vm0, %v3666_v21 }
 0x1c6   : > { %v1490_v12 = vmin.f32 %v664_v6, %v666_v11  ;;  %v1854_v13 = vmin.f32 %v1853_v1, %v666_v11  ;;  %v1992_v14 = vmin.f32 %v1991_v2, %v1115_v4  ;;  %v1487_v15 = vmin.f32 %v1486_v8, %v1109_v62  ;;  %986 = vmatprep.mubr.f32.mxu0 %v3208_v0 }
 0x1c7   : > { %1435 = vmatprep.mubr.f32.mxu1 %v3208_v0 }
 0x1c8   : > { %1488 = vmin.xlane.f32.xlu1 %v1487_v15  ;;  %v670_v16 = vpop.f32.mrb[14].mxu0  ;;  %v1119_v17 = vpop.f32.mrb[14].mxu1  ;;  %v1491_v18 = vmin.f32 %v1490_v12, %v1113_v7 }
 0x1c9   : > { %v1786_v19 = vmin.f32 %v1785_v9, %v670_v16  ;;  %v1924_v20 = vmin.f32 %v1923_v10, %v1119_v17  ;;  %v672_v22 = vpop.f32.mrb[15].mxu0  ;;  %2914 = vmatmul.mubr.msk.f32.gmra.mrb[120].mxu0 %vm369_vm0, %v365_v44  ;;  %v1121_v23 = vpop.f32.mrb[15].mxu1  ;;  %2978 = vmatmul.mubr.msk.f32.gmra.mrb[120].mxu1 %vm369_vm0, %v365_v44 }
 0x1ca   : > { %v1495_v21 = vmin.f32 %v670_v16, %v672_v22  ;;  %v1855_v24 = vmin.f32 %v1854_v13, %v672_v22  ;;  %v1993_v25 = vmin.f32 %v1992_v14, %v1121_v23  ;;  %v1492_v26 = vmin.f32 %v1491_v18, %v1115_v4  ;;  %992 = vmatprep.mubr.f32.mxu0 %v3208_v0 }
 0x1cb   : > { %1441 = vmatprep.mubr.f32.mxu1 %v3208_v0 }
 0x1cc   : > { %1493 = vmin.xlane.f32.xlu0 %v1492_v26  ;;  %v676_v28 = vpop.f32.mrb[16].mxu0  ;;  %v1125_v29 = vpop.f32.mrb[16].mxu1  ;;  %v1496_v30 = vmin.f32 %v1495_v21, %v1119_v17 }
 0x1cd   : > { %v1787_v31 = vmin.f32 %v1786_v19, %v676_v28  ;;  %v1925_v32 = vmin.f32 %v1924_v20, %v1125_v29  ;;  %v678_v33 = vpop.f32.mrb[17].mxu0  ;;  %2915 = vmatmul.mubr.msk.f32.gmra.mrb[122].mxu0 %vm369_vm0, %v366_v5  ;;  %v1127_v34 = vpop.f32.mrb[17].mxu1  ;;  %2979 = vmatmul.mubr.msk.f32.gmra.mrb[122].mxu1 %vm369_vm0, %v366_v5 }
 0x1ce   : > { %v1500_v35 = vmin.f32 %v676_v28, %v678_v33  ;;  %v1856_v36 = vmin.f32 %v1855_v24, %v678_v33  ;;  %v1994_v37 = vmin.f32 %v1993_v25, %v1127_v34  ;;  %v1497_v38 = vmin.f32 %v1496_v30, %v1121_v23  ;;  %998 = vmatprep.mubr.f32.mxu0 %v3208_v0 }
 0x1cf   : > { %1447 = vmatprep.mubr.f32.mxu1 %v3208_v0 }
 0x1d0   : > { %1498 = vmin.xlane.f32.xlu1 %v1497_v38  ;;  %v682_v39 = vpop.f32.mrb[18].mxu0  ;;  %v1131_v40 = vpop.f32.mrb[18].mxu1  ;;  %v1501_v41 = vmin.f32 %v1500_v35, %v1125_v29 }
 0x1d1   : > { %v1788_v42 = vmin.f32 %v1787_v31, %v682_v39  ;;  %v1926_v43 = vmin.f32 %v1925_v32, %v1131_v40  ;;  %v684_v44 = vpop.f32.mrb[19].mxu0  ;;  %2916 = vmatmul.mubr.msk.f32.gmra.mrb[124].mxu0 %vm369_vm0, %v367_v27  ;;  %v1133_v45 = vpop.f32.mrb[19].mxu1  ;;  %2980 = vmatmul.mubr.msk.f32.gmra.mrb[124].mxu1 %vm369_vm0, %v367_v27 }
 0x1d2   : > { %v1505_v46 = vmin.f32 %v682_v39, %v684_v44  ;;  %v1857_v47 = vmin.f32 %v1856_v36, %v684_v44  ;;  %v1995_v48 = vmin.f32 %v1994_v37, %v1133_v45  ;;  %v1502_v50 = vmin.f32 %v1501_v41, %v1127_v34  ;;  %1004 = vmatprep.mubr.f32.mxu0 %v3208_v0 }
 0x1d3   : > { %1453 = vmatprep.mubr.f32.mxu1 %v3208_v0 }
 0x1d4   : > { %1503 = vmin.xlane.f32.xlu0 %v1502_v50  ;;  %v688_v51 = vpop.f32.mrb[20].mxu0  ;;  %v1137_v52 = vpop.f32.mrb[20].mxu1  ;;  %v1506_v53 = vmin.f32 %v1505_v46, %v1131_v40 }
 0x1d5   : > { %v1789_v54 = vmin.f32 %v1788_v42, %v688_v51  ;;  %v1927_v55 = vmin.f32 %v1926_v43, %v1137_v52  ;;  %v690_v56 = vpop.f32.mrb[21].mxu0  ;;  %2917 = vmatmul.mubr.msk.f32.gmra.mrb[126].mxu0 %vm369_vm0, %v368_v49  ;;  %v1139_v57 = vpop.f32.mrb[21].mxu1  ;;  %2981 = vmatmul.mubr.msk.f32.gmra.mrb[126].mxu1 %vm369_vm0, %v368_v49 }
 0x1d6   : > { %v1510_v58 = vmin.f32 %v688_v51, %v690_v56  ;;  %v1858_v59 = vmin.f32 %v1857_v47, %v690_v56  ;;  %v1996_v60 = vmin.f32 %v1995_v48, %v1139_v57  ;;  %v1507_v61 = vmin.f32 %v1506_v53, %v1133_v45 }
 0x1d8   : > { %1508 = vmin.xlane.f32.xlu1 %v1507_v61  ;;  %v694_v62 = vpop.f32.mrb[22].mxu0  ;;  %v1143_v63 = vpop.f32.mrb[22].mxu1  ;;  %v1511_v1 = vmin.f32 %v1510_v58, %v1137_v52 }
 0x1d9   : > { %v1790_v2 = vmin.f32 %v1789_v54, %v694_v62  ;;  %v1928_v3 = vmin.f32 %v1927_v55, %v1143_v63  ;;  %v696_v5 = vpop.f32.mrb[23].mxu0  ;;  %v1145_v6 = vpop.f32.mrb[23].mxu1 }
 0x1da   : > { %v1515_v7 = vmin.f32 %v694_v62, %v696_v5  ;;  %v1859_v8 = vmin.f32 %v1858_v59, %v696_v5  ;;  %v1997_v9 = vmin.f32 %v1996_v60, %v1145_v6  ;;  %v1512_v10 = vmin.f32 %v1511_v1, %v1139_v57 }
 0x1dc   : > { %1513 = vmin.xlane.f32.xlu0 %v1512_v10  ;;  %v700_v11 = vpop.f32.mrb[24].mxu0  ;;  %v1149_v4 = vpop.f32.mrb[24].mxu1  ;;  %v1516_v12 = vmin.f32 %v1515_v7, %v1143_v63 }
 0x1dd   : > { %v1791_v13 = vmin.f32 %v1790_v2, %v700_v11  ;;  %v1929_v14 = vmin.f32 %v1928_v3, %v1149_v4  ;;  %v702_v15 = vpop.f32.mrb[25].mxu0  ;;  %v1151_v16 = vpop.f32.mrb[25].mxu1 }
 0x1de   : > { %v1520_v17 = vmin.f32 %v700_v11, %v702_v15  ;;  %v1860_v18 = vmin.f32 %v1859_v8, %v702_v15  ;;  %v1998_v19 = vmin.f32 %v1997_v9, %v1151_v16  ;;  %v1517_v20 = vmin.f32 %v1516_v12, %v1145_v6 }
 0x1e0   : > { %1518 = vmin.xlane.f32.xlu1 %v1517_v20  ;;  %v706_v22 = vpop.f32.mrb[26].mxu0  ;;  %v1155_v23 = vpop.f32.mrb[26].mxu1  ;;  %v1521_v21 = vmin.f32 %v1520_v17, %v1149_v4 }
 0x1e1   : > { %v1792_v24 = vmin.f32 %v1791_v13, %v706_v22  ;;  %v1930_v25 = vmin.f32 %v1929_v14, %v1155_v23  ;;  %v708_v26 = vpop.f32.mrb[27].mxu0  ;;  %v1157_v27 = vpop.f32.mrb[27].mxu1 }
 0x1e2   : > { %v1525_v28 = vmin.f32 %v706_v22, %v708_v26  ;;  %v1861_v29 = vmin.f32 %v1860_v18, %v708_v26  ;;  %v1999_v30 = vmin.f32 %v1998_v19, %v1157_v27  ;;  %v1522_v31 = vmin.f32 %v1521_v21, %v1151_v16 }
 0x1e4   : > { %1523 = vmin.xlane.f32.xlu0 %v1522_v31  ;;  %v712_v32 = vpop.f32.mrb[28].mxu0  ;;  %v1161_v33 = vpop.f32.mrb[28].mxu1  ;;  %v1526_v34 = vmin.f32 %v1525_v28, %v1155_v23 }
 0x1e5   : > { %v1793_v35 = vmin.f32 %v1792_v24, %v712_v32  ;;  %v1931_v36 = vmin.f32 %v1930_v25, %v1161_v33  ;;  %v714_v37 = vpop.f32.mrb[29].mxu0  ;;  %v1163_v38 = vpop.f32.mrb[29].mxu1 }
 0x1e6   : > { %v1530_v39 = vmin.f32 %v712_v32, %v714_v37  ;;  %v1862_v40 = vmin.f32 %v1861_v29, %v714_v37  ;;  %v2000_v41 = vmin.f32 %v1999_v30, %v1163_v38  ;;  %v1527_v42 = vmin.f32 %v1526_v34, %v1157_v27 }
 0x1e8   : > { %1528 = vmin.xlane.f32.xlu1 %v1527_v42  ;;  %v718_v43 = vpop.f32.mrb[30].mxu0  ;;  %v1167_v44 = vpop.f32.mrb[30].mxu1  ;;  %v1531_v45 = vmin.f32 %v1530_v39, %v1161_v33 }
 0x1e9   : > { %v1794_v46 = vmin.f32 %v1793_v35, %v718_v43  ;;  %v1932_v47 = vmin.f32 %v1931_v36, %v1167_v44  ;;  %v720_v48 = vpop.f32.mrb[31].mxu0  ;;  %v1169_v49 = vpop.f32.mrb[31].mxu1 }
 0x1ea   : > { %v1535_v50 = vmin.f32 %v718_v43, %v720_v48  ;;  %v1863_v51 = vmin.f32 %v1862_v40, %v720_v48  ;;  %v2001_v52 = vmin.f32 %v2000_v41, %v1169_v49  ;;  %v1532_v53 = vmin.f32 %v1531_v45, %v1163_v38 }
 0x1ec   : > { %1533 = vmin.xlane.f32.xlu0 %v1532_v53  ;;  %v724_v54 = vpop.f32.mrb[32].mxu0  ;;  %v1173_v55 = vpop.f32.mrb[32].mxu1  ;;  %v1536_v56 = vmin.f32 %v1535_v50, %v1167_v44 }
 0x1ed   : > { %v1795_v57 = vmin.f32 %v1794_v46, %v724_v54  ;;  %v1933_v58 = vmin.f32 %v1932_v47, %v1173_v55  ;;  %v726_v59 = vpop.f32.mrb[33].mxu0  ;;  %v1175_v60 = vpop.f32.mrb[33].mxu1 }
 0x1ee   : > { %v1540_v61 = vmin.f32 %v724_v54, %v726_v59  ;;  %v1864_v62 = vmin.f32 %v1863_v51, %v726_v59  ;;  %v2002_v63 = vmin.f32 %v2001_v52, %v1175_v60  ;;  %v1537_v1 = vmin.f32 %v1536_v56, %v1169_v49 }
 0x1f0   : > { %1538 = vmin.xlane.f32.xlu1 %v1537_v1  ;;  %v730_v2 = vpop.f32.mrb[34].mxu0  ;;  %v1179_v3 = vpop.f32.mrb[34].mxu1  ;;  %v1541_v5 = vmin.f32 %v1540_v61, %v1173_v55 }
 0x1f1   : > { %v1796_v6 = vmin.f32 %v1795_v57, %v730_v2  ;;  %v1934_v7 = vmin.f32 %v1933_v58, %v1179_v3  ;;  %v732_v8 = vpop.f32.mrb[35].mxu0  ;;  %v1181_v9 = vpop.f32.mrb[35].mxu1 }
 0x1f2   : > { %v1545_v10 = vmin.f32 %v730_v2, %v732_v8  ;;  %v1865_v11 = vmin.f32 %v1864_v62, %v732_v8  ;;  %v2003_v4 = vmin.f32 %v2002_v63, %v1181_v9  ;;  %v1542_v12 = vmin.f32 %v1541_v5, %v1175_v60 }
 0x1f4   : > { %1543 = vmin.xlane.f32.xlu0 %v1542_v12  ;;  %v736_v13 = vpop.f32.mrb[36].mxu0  ;;  %v1185_v14 = vpop.f32.mrb[36].mxu1  ;;  %v1546_v15 = vmin.f32 %v1545_v10, %v1179_v3 }
 0x1f5   : > { %v1797_v16 = vmin.f32 %v1796_v6, %v736_v13  ;;  %v1935_v17 = vmin.f32 %v1934_v7, %v1185_v14  ;;  %v738_v18 = vpop.f32.mrb[37].mxu0  ;;  %v1187_v19 = vpop.f32.mrb[37].mxu1 }
 0x1f6   : > { %v1550_v20 = vmin.f32 %v736_v13, %v738_v18  ;;  %v1866_v22 = vmin.f32 %v1865_v11, %v738_v18  ;;  %v2004_v23 = vmin.f32 %v2003_v4, %v1187_v19  ;;  %v1547_v21 = vmin.f32 %v1546_v15, %v1181_v9 }
 0x1f8   : > { %1548 = vmin.xlane.f32.xlu1 %v1547_v21  ;;  %v742_v24 = vpop.f32.mrb[38].mxu0  ;;  %v1191_v25 = vpop.f32.mrb[38].mxu1  ;;  %v1551_v26 = vmin.f32 %v1550_v20, %v1185_v14 }
 0x1f9   : > { %v1798_v27 = vmin.f32 %v1797_v16, %v742_v24  ;;  %v1936_v28 = vmin.f32 %v1935_v17, %v1191_v25  ;;  %v744_v29 = vpop.f32.mrb[39].mxu0  ;;  %v1193_v30 = vpop.f32.mrb[39].mxu1 }
 0x1fa   : > { %v1555_v31 = vmin.f32 %v742_v24, %v744_v29  ;;  %v1867_v32 = vmin.f32 %v1866_v22, %v744_v29  ;;  %v2005_v33 = vmin.f32 %v2004_v23, %v1193_v30  ;;  %v1552_v34 = vmin.f32 %v1551_v26, %v1187_v19 }
 0x1fc   : > { %1553 = vmin.xlane.f32.xlu0 %v1552_v34  ;;  %v748_v35 = vpop.f32.mrb[40].mxu0  ;;  %v1197_v36 = vpop.f32.mrb[40].mxu1  ;;  %v1556_v37 = vmin.f32 %v1555_v31, %v1191_v25 }
 0x1fd   : > { %v1799_v38 = vmin.f32 %v1798_v27, %v748_v35  ;;  %v1937_v39 = vmin.f32 %v1936_v28, %v1197_v36  ;;  %v750_v40 = vpop.f32.mrb[41].mxu0  ;;  %v1199_v41 = vpop.f32.mrb[41].mxu1 }
 0x1fe   : > { %v1560_v42 = vmin.f32 %v748_v35, %v750_v40  ;;  %v1868_v43 = vmin.f32 %v1867_v32, %v750_v40  ;;  %v2006_v44 = vmin.f32 %v2005_v33, %v1199_v41  ;;  %v1557_v45 = vmin.f32 %v1556_v37, %v1193_v30 }
 0x200   : > { %1558 = vmin.xlane.f32.xlu1 %v1557_v45  ;;  %v754_v46 = vpop.f32.mrb[42].mxu0  ;;  %v1203_v47 = vpop.f32.mrb[42].mxu1  ;;  %v1561_v48 = vmin.f32 %v1560_v42, %v1197_v36 }
 0x201   : > { %v1800_v49 = vmin.f32 %v1799_v38, %v754_v46  ;;  %v1938_v50 = vmin.f32 %v1937_v39, %v1203_v47  ;;  %v756_v51 = vpop.f32.mrb[43].mxu0  ;;  %v1205_v52 = vpop.f32.mrb[43].mxu1 }
 0x202   : > { %v1565_v53 = vmin.f32 %v754_v46, %v756_v51  ;;  %v1869_v54 = vmin.f32 %v1868_v43, %v756_v51  ;;  %v2007_v55 = vmin.f32 %v2006_v44, %v1205_v52  ;;  %v1562_v56 = vmin.f32 %v1561_v48, %v1199_v41 }
 0x204   : > { %1563 = vmin.xlane.f32.xlu0 %v1562_v56  ;;  %v760_v57 = vpop.f32.mrb[44].mxu0  ;;  %v1209_v58 = vpop.f32.mrb[44].mxu1  ;;  %v1566_v59 = vmin.f32 %v1565_v53, %v1203_v47 }
 0x205   : > { %v1801_v60 = vmin.f32 %v1800_v49, %v760_v57  ;;  %v1939_v61 = vmin.f32 %v1938_v50, %v1209_v58  ;;  %v762_v62 = vpop.f32.mrb[45].mxu0  ;;  %v1211_v63 = vpop.f32.mrb[45].mxu1 }
 0x206   : > { %v1570_v1 = vmin.f32 %v760_v57, %v762_v62  ;;  %v1870_v2 = vmin.f32 %v1869_v54, %v762_v62  ;;  %v2008_v3 = vmin.f32 %v2007_v55, %v1211_v63  ;;  %v1567_v5 = vmin.f32 %v1566_v59, %v1205_v52 }
 0x208   : > { %1568 = vmin.xlane.f32.xlu1 %v1567_v5  ;;  %v766_v6 = vpop.f32.mrb[46].mxu0  ;;  %v1215_v7 = vpop.f32.mrb[46].mxu1  ;;  %v1571_v8 = vmin.f32 %v1570_v1, %v1209_v58 }
 0x209   : > { %v1802_v9 = vmin.f32 %v1801_v60, %v766_v6  ;;  %v1940_v10 = vmin.f32 %v1939_v61, %v1215_v7  ;;  %v768_v11 = vpop.f32.mrb[47].mxu0  ;;  %v1217_v4 = vpop.f32.mrb[47].mxu1 }
 0x20a   : > { %v1575_v12 = vmin.f32 %v766_v6, %v768_v11  ;;  %v1871_v13 = vmin.f32 %v1870_v2, %v768_v11  ;;  %v2009_v14 = vmin.f32 %v2008_v3, %v1217_v4  ;;  %v1572_v15 = vmin.f32 %v1571_v8, %v1211_v63 }
 0x20c   : > { %1573 = vmin.xlane.f32.xlu0 %v1572_v15  ;;  %v772_v16 = vpop.f32.mrb[48].mxu0  ;;  %v1221_v17 = vpop.f32.mrb[48].mxu1  ;;  %v1576_v18 = vmin.f32 %v1575_v12, %v1215_v7 }
 0x20d   : > { %v1803_v19 = vmin.f32 %v1802_v9, %v772_v16  ;;  %v1941_v20 = vmin.f32 %v1940_v10, %v1221_v17  ;;  %v774_v22 = vpop.f32.mrb[49].mxu0  ;;  %v1223_v23 = vpop.f32.mrb[49].mxu1 }
 0x20e   : > { %v1580_v21 = vmin.f32 %v772_v16, %v774_v22  ;;  %v1872_v24 = vmin.f32 %v1871_v13, %v774_v22  ;;  %v2010_v25 = vmin.f32 %v2009_v14, %v1223_v23  ;;  %v1577_v26 = vmin.f32 %v1576_v18, %v1217_v4 }
 0x210   : > { %1578 = vmin.xlane.f32.xlu1 %v1577_v26  ;;  %v778_v27 = vpop.f32.mrb[50].mxu0  ;;  %v1227_v28 = vpop.f32.mrb[50].mxu1  ;;  %v1581_v29 = vmin.f32 %v1580_v21, %v1221_v17 }
 0x211   : > { %v1804_v30 = vmin.f32 %v1803_v19, %v778_v27  ;;  %v1942_v31 = vmin.f32 %v1941_v20, %v1227_v28  ;;  %v780_v32 = vpop.f32.mrb[51].mxu0  ;;  %v1229_v33 = vpop.f32.mrb[51].mxu1 }
 0x212   : > { %v1585_v34 = vmin.f32 %v778_v27, %v780_v32  ;;  %v1873_v35 = vmin.f32 %v1872_v24, %v780_v32  ;;  %v2011_v36 = vmin.f32 %v2010_v25, %v1229_v33  ;;  %v1582_v37 = vmin.f32 %v1581_v29, %v1223_v23 }
 0x214   : > { %1583 = vmin.xlane.f32.xlu0 %v1582_v37  ;;  %v784_v38 = vpop.f32.mrb[52].mxu0  ;;  %v1233_v39 = vpop.f32.mrb[52].mxu1  ;;  %v1586_v40 = vmin.f32 %v1585_v34, %v1227_v28 }
 0x215   : > { %v1805_v41 = vmin.f32 %v1804_v30, %v784_v38  ;;  %v1943_v42 = vmin.f32 %v1942_v31, %v1233_v39  ;;  %v786_v43 = vpop.f32.mrb[53].mxu0  ;;  %v1235_v44 = vpop.f32.mrb[53].mxu1 }
 0x216   : > { %v1590_v45 = vmin.f32 %v784_v38, %v786_v43  ;;  %v1874_v46 = vmin.f32 %v1873_v35, %v786_v43  ;;  %v2012_v47 = vmin.f32 %v2011_v36, %v1235_v44  ;;  %v1587_v48 = vmin.f32 %v1586_v40, %v1229_v33 }
 0x218   : > { %1588 = vmin.xlane.f32.xlu1 %v1587_v48  ;;  %v790_v49 = vpop.f32.mrb[54].mxu0  ;;  %v1239_v50 = vpop.f32.mrb[54].mxu1  ;;  %v1591_v51 = vmin.f32 %v1590_v45, %v1233_v39 }
 0x219   : > { %v1806_v52 = vmin.f32 %v1805_v41, %v790_v49  ;;  %v1944_v53 = vmin.f32 %v1943_v42, %v1239_v50  ;;  %v792_v54 = vpop.f32.mrb[55].mxu0  ;;  %v1241_v55 = vpop.f32.mrb[55].mxu1 }
 0x21a   : > { %v1595_v56 = vmin.f32 %v790_v49, %v792_v54  ;;  %v1875_v57 = vmin.f32 %v1874_v46, %v792_v54  ;;  %v2013_v58 = vmin.f32 %v2012_v47, %v1241_v55  ;;  %v1592_v59 = vmin.f32 %v1591_v51, %v1235_v44 }
 0x21c   : > { %1593 = vmin.xlane.f32.xlu0 %v1592_v59  ;;  %v796_v60 = vpop.f32.mrb[56].mxu0  ;;  %v1245_v61 = vpop.f32.mrb[56].mxu1  ;;  %v1596_v62 = vmin.f32 %v1595_v56, %v1239_v50 }
 0x21d   : > { %v1807_v63 = vmin.f32 %v1806_v52, %v796_v60  ;;  %v1945_v1 = vmin.f32 %v1944_v53, %v1245_v61  ;;  %v798_v2 = vpop.f32.mrb[57].mxu0  ;;  %v1247_v3 = vpop.f32.mrb[57].mxu1 }
 0x21e   : > { %v1600_v5 = vmin.f32 %v796_v60, %v798_v2  ;;  %v1876_v6 = vmin.f32 %v1875_v57, %v798_v2  ;;  %v2014_v7 = vmin.f32 %v2013_v58, %v1247_v3  ;;  %v1597_v8 = vmin.f32 %v1596_v62, %v1241_v55 }
 0x220   : > { %1598 = vmin.xlane.f32.xlu1 %v1597_v8  ;;  %v802_v9 = vpop.f32.mrb[58].mxu0  ;;  %v1251_v10 = vpop.f32.mrb[58].mxu1  ;;  %v1601_v11 = vmin.f32 %v1600_v5, %v1245_v61 }
 0x221   : > { %v1808_v4 = vmin.f32 %v1807_v63, %v802_v9  ;;  %v1946_v12 = vmin.f32 %v1945_v1, %v1251_v10  ;;  %v804_v13 = vpop.f32.mrb[59].mxu0  ;;  %v1253_v14 = vpop.f32.mrb[59].mxu1 }
 0x222   : > { %v1605_v15 = vmin.f32 %v802_v9, %v804_v13  ;;  %v1877_v16 = vmin.f32 %v1876_v6, %v804_v13  ;;  %v2015_v17 = vmin.f32 %v2014_v7, %v1253_v14  ;;  %v1602_v18 = vmin.f32 %v1601_v11, %v1247_v3 }
 0x224   : > { %1603 = vmin.xlane.f32.xlu0 %v1602_v18  ;;  %v808_v19 = vpop.f32.mrb[60].mxu0  ;;  %v1257_v20 = vpop.f32.mrb[60].mxu1  ;;  %v1606_v22 = vmin.f32 %v1605_v15, %v1251_v10 }
 0x225   : > { %v1809_v23 = vmin.f32 %v1808_v4, %v808_v19  ;;  %v1947_v21 = vmin.f32 %v1946_v12, %v1257_v20  ;;  %v810_v24 = vpop.f32.mrb[61].mxu0  ;;  %v1259_v25 = vpop.f32.mrb[61].mxu1 }
 0x226   : > { %v1610_v26 = vmin.f32 %v808_v19, %v810_v24  ;;  %v1878_v27 = vmin.f32 %v1877_v16, %v810_v24  ;;  %v2016_v28 = vmin.f32 %v2015_v17, %v1259_v25  ;;  %v1607_v29 = vmin.f32 %v1606_v22, %v1253_v14 }
 0x228   : > { %1608 = vmin.xlane.f32.xlu1 %v1607_v29  ;;  %v814_v30 = vpop.f32.mrb[62].mxu0  ;;  %v1263_v31 = vpop.f32.mrb[62].mxu1  ;;  %v1611_v32 = vmin.f32 %v1610_v26, %v1257_v20 }
 0x229   : > { %v1810_v33 = vmin.f32 %v1809_v23, %v814_v30  ;;  %v1948_v34 = vmin.f32 %v1947_v21, %v1263_v31  ;;  %v816_v35 = vpop.f32.mrb[63].mxu0  ;;  %v1265_v36 = vpop.f32.mrb[63].mxu1 }
 0x22a   : > { %v1615_v37 = vmin.f32 %v814_v30, %v816_v35  ;;  %v1879_v38 = vmin.f32 %v1878_v27, %v816_v35  ;;  %v2017_v39 = vmin.f32 %v2016_v28, %v1265_v36  ;;  %v1612_v40 = vmin.f32 %v1611_v32, %v1259_v25 }
 0x22c   : > { %1613 = vmin.xlane.f32.xlu0 %v1612_v40  ;;  %v820_v41 = vpop.f32.mrb[64].mxu0  ;;  %v1269_v42 = vpop.f32.mrb[64].mxu1  ;;  %v1616_v43 = vmin.f32 %v1615_v37, %v1263_v31 }
 0x22d   : > { %v1811_v44 = vmin.f32 %v1810_v33, %v820_v41  ;;  %v1949_v45 = vmin.f32 %v1948_v34, %v1269_v42  ;;  %v822_v46 = vpop.f32.mrb[65].mxu0  ;;  %v1271_v47 = vpop.f32.mrb[65].mxu1 }
 0x22e   : > { %v1620_v48 = vmin.f32 %v820_v41, %v822_v46  ;;  %v1880_v49 = vmin.f32 %v1879_v38, %v822_v46  ;;  %v2018_v50 = vmin.f32 %v2017_v39, %v1271_v47  ;;  %v1617_v51 = vmin.f32 %v1616_v43, %v1265_v36 }
 0x230   : > { %v1275_v52 = vpop.f32.mrb[66].mxu1  ;;  %1618 = vmin.xlane.f32.xlu1 %v1617_v51  ;;  %v826_v53 = vpop.f32.mrb[66].mxu0  ;;  %v1621_v54 = vmin.f32 %v1620_v48, %v1269_v42 }
 0x231   : > { %v1950_v55 = vmin.f32 %v1949_v45, %v1275_v52  ;;  %v1812_v56 = vmin.f32 %v1811_v44, %v826_v53  ;;  %v828_v57 = vpop.f32.mrb[67].mxu0  ;;  %v1277_v58 = vpop.f32.mrb[67].mxu1 }
 0x232   : > { %v1625_v59 = vmin.f32 %v826_v53, %v828_v57  ;;  %v1881_v60 = vmin.f32 %v1880_v49, %v828_v57  ;;  %v2019_v61 = vmin.f32 %v2018_v50, %v1277_v58  ;;  %v1622_v62 = vmin.f32 %v1621_v54, %v1271_v47 }
 0x234   : > { %v1626_v63 = vmin.f32 %v1625_v59, %v1275_v52  ;;  %v1281_v1 = vpop.f32.mrb[68].mxu1  ;;  %1623 = vmin.xlane.f32.xlu0 %v1622_v62  ;;  %v832_v2 = vpop.f32.mrb[68].mxu0 }
 0x235   : > { %v1951_v3 = vmin.f32 %v1950_v55, %v1281_v1  ;;  %v1813_v5 = vmin.f32 %v1812_v56, %v832_v2  ;;  %v834_v6 = vpop.f32.mrb[69].mxu0  ;;  %v1283_v7 = vpop.f32.mrb[69].mxu1 }
 0x236   : > { %v1627_v8 = vmin.f32 %v1626_v63, %v1277_v58  ;;  %v1630_v9 = vmin.f32 %v832_v2, %v834_v6  ;;  %v1882_v10 = vmin.f32 %v1881_v60, %v834_v6  ;;  %v2020_v11 = vmin.f32 %v2019_v61, %v1283_v7 }
 0x238   : > { %v1287_v4 = vpop.f32.mrb[70].mxu1  ;;  %1628 = vmin.xlane.f32.xlu1 %v1627_v8  ;;  %v838_v12 = vpop.f32.mrb[70].mxu0  ;;  %v1631_v13 = vmin.f32 %v1630_v9, %v1281_v1 }
 0x239   : > { %v1952_v14 = vmin.f32 %v1951_v3, %v1287_v4  ;;  %v1814_v15 = vmin.f32 %v1813_v5, %v838_v12  ;;  %v840_v16 = vpop.f32.mrb[71].mxu0  ;;  %v1289_v17 = vpop.f32.mrb[71].mxu1 }
 0x23a   : > { %v1635_v18 = vmin.f32 %v838_v12, %v840_v16  ;;  %v1883_v19 = vmin.f32 %v1882_v10, %v840_v16  ;;  %v2021_v20 = vmin.f32 %v2020_v11, %v1289_v17  ;;  %v1632_v22 = vmin.f32 %v1631_v13, %v1283_v7 }
 0x23c   : > { %v1636_v23 = vmin.f32 %v1635_v18, %v1287_v4  ;;  %v1293_v21 = vpop.f32.mrb[72].mxu1  ;;  %1633 = vmin.xlane.f32.xlu0 %v1632_v22  ;;  %v844_v24 = vpop.f32.mrb[72].mxu0 }
 0x23d   : > { %v1953_v25 = vmin.f32 %v1952_v14, %v1293_v21  ;;  %v1815_v26 = vmin.f32 %v1814_v15, %v844_v24  ;;  %v846_v27 = vpop.f32.mrb[73].mxu0  ;;  %v1295_v28 = vpop.f32.mrb[73].mxu1 }
 0x23e   : > { %v1637_v29 = vmin.f32 %v1636_v23, %v1289_v17  ;;  %v1640_v30 = vmin.f32 %v844_v24, %v846_v27  ;;  %v1884_v31 = vmin.f32 %v1883_v19, %v846_v27  ;;  %v2022_v32 = vmin.f32 %v2021_v20, %v1295_v28 }
 0x240   : > { %v1641_v33 = vmin.f32 %v1640_v30, %v1293_v21  ;;  %v1299_v34 = vpop.f32.mrb[74].mxu1  ;;  %1638 = vmin.xlane.f32.xlu1 %v1637_v29  ;;  %v850_v35 = vpop.f32.mrb[74].mxu0 }
 0x241   : > { %v1954_v36 = vmin.f32 %v1953_v25, %v1299_v34  ;;  %v1816_v37 = vmin.f32 %v1815_v26, %v850_v35  ;;  %v852_v38 = vpop.f32.mrb[75].mxu0  ;;  %v1301_v39 = vpop.f32.mrb[75].mxu1 }
 0x242   : > { %v1642_v40 = vmin.f32 %v1641_v33, %v1295_v28  ;;  %v1645_v41 = vmin.f32 %v850_v35, %v852_v38  ;;  %v1885_v42 = vmin.f32 %v1884_v31, %v852_v38  ;;  %v2023_v43 = vmin.f32 %v2022_v32, %v1301_v39  ;;  %v1464_v44 = vpop.xlane.xlu0 %1463 }
 0x243   : > { %2060 = vst.msk [vmem:[#allocation2] sm:$0xff] %vm2059_vm1, %v1464_v44 }
 0x244   : > { %v1646_v45 = vmin.f32 %v1645_v41, %v1299_v34  ;;  %v1305_v46 = vpop.f32.mrb[76].mxu1  ;;  %1643 = vmin.xlane.f32.xlu0 %v1642_v40  ;;  %v856_v47 = vpop.f32.mrb[76].mxu0 }
 0x245   : > { %v1955_v48 = vmin.f32 %v1954_v36, %v1305_v46  ;;  %v1817_v49 = vmin.f32 %v1816_v37, %v856_v47  ;;  %v1469_v50 = vpop.xlane.xlu1 %1468  ;;  %v858_v51 = vpop.f32.mrb[77].mxu0 }
 0x246   : > { %v1647_v52 = vmin.f32 %v1646_v45, %v1301_v39  ;;  %2061 = vst.msk [vmem:[#allocation2 + $0x8] sm:$0xff] %vm2059_vm1, %v1469_v50  ;;  %v1650_v53 = vmin.f32 %v856_v47, %v858_v51  ;;  %v1886_v54 = vmin.f32 %v1885_v42, %v858_v51  ;;  %v1307_v55 = vpop.f32.mrb[77].mxu1 }
 0x247   : > { %v2024_v56 = vmin.f32 %v2023_v43, %v1307_v55 }
 0x248   : > { %v1651_v57 = vmin.f32 %v1650_v53, %v1305_v46  ;;  %v1311_v58 = vpop.f32.mrb[78].mxu1  ;;  %1648 = vmin.xlane.f32.xlu1 %v1647_v52  ;;  %v862_v59 = vpop.f32.mrb[78].mxu0 }
 0x249   : > { %v1956_v60 = vmin.f32 %v1955_v48, %v1311_v58  ;;  %v1818_v61 = vmin.f32 %v1817_v49, %v862_v59  ;;  %v1474_v62 = vpop.xlane.xlu1 %1473  ;;  %v864_v63 = vpop.f32.mrb[79].mxu0 }
 0x24a   : > { %v1652_v1 = vmin.f32 %v1651_v57, %v1307_v55  ;;  %2062 = vst.msk [vmem:[#allocation2 + $0x10] sm:$0xff] %vm2059_vm1, %v1474_v62  ;;  %v1655_v2 = vmin.f32 %v862_v59, %v864_v63  ;;  %v1887_v3 = vmin.f32 %v1886_v54, %v864_v63  ;;  %v1313_v5 = vpop.f32.mrb[79].mxu1 }
 0x24b   : > { %v2025_v6 = vmin.f32 %v2024_v56, %v1313_v5 }
 0x24c   : > { %v1656_v7 = vmin.f32 %v1655_v2, %v1311_v58  ;;  %v1317_v8 = vpop.f32.mrb[80].mxu1  ;;  %1653 = vmin.xlane.f32.xlu0 %v1652_v1  ;;  %v868_v9 = vpop.f32.mrb[80].mxu0 }
 0x24d   : > { %v1957_v10 = vmin.f32 %v1956_v60, %v1317_v8  ;;  %v1819_v11 = vmin.f32 %v1818_v61, %v868_v9  ;;  %v1479_v4 = vpop.xlane.xlu1 %1478  ;;  %v870_v12 = vpop.f32.mrb[81].mxu0 }
 0x24e   : > { %v1657_v13 = vmin.f32 %v1656_v7, %v1313_v5  ;;  %2063 = vst.msk [vmem:[#allocation2 + $0x18] sm:$0xff] %vm2059_vm1, %v1479_v4  ;;  %v1660_v14 = vmin.f32 %v868_v9, %v870_v12  ;;  %v1888_v15 = vmin.f32 %v1887_v3, %v870_v12  ;;  %v1319_v16 = vpop.f32.mrb[81].mxu1 }
 0x24f   : > { %v2026_v17 = vmin.f32 %v2025_v6, %v1319_v16 }
 0x250   : > { %v1661_v18 = vmin.f32 %v1660_v14, %v1317_v8  ;;  %v1323_v19 = vpop.f32.mrb[82].mxu1  ;;  %1658 = vmin.xlane.f32.xlu1 %v1657_v13  ;;  %v874_v20 = vpop.f32.mrb[82].mxu0 }
 0x251   : > { %v1958_v22 = vmin.f32 %v1957_v10, %v1323_v19  ;;  %v1820_v23 = vmin.f32 %v1819_v11, %v874_v20  ;;  %v876_v21 = vpop.f32.mrb[83].mxu0  ;;  %v1325_v24 = vpop.f32.mrb[83].mxu1 }
 0x252   : > { %v1662_v25 = vmin.f32 %v1661_v18, %v1319_v16  ;;  %v1665_v26 = vmin.f32 %v874_v20, %v876_v21  ;;  %v1889_v27 = vmin.f32 %v1888_v15, %v876_v21  ;;  %v1484_v28 = vpop.xlane.xlu0 %1483  ;;  %v2027_v29 = vmin.f32 %v2026_v17, %v1325_v24 }
 0x253   : > { %2064 = vst.msk [vmem:[#allocation2 + $0x20] sm:$0xff] %vm2059_vm1, %v1484_v28 }
 0x254   : > { %v1666_v30 = vmin.f32 %v1665_v26, %v1323_v19  ;;  %v1329_v31 = vpop.f32.mrb[84].mxu1  ;;  %1663 = vmin.xlane.f32.xlu0 %v1662_v25  ;;  %v880_v32 = vpop.f32.mrb[84].mxu0 }
 0x255   : > { %v1959_v33 = vmin.f32 %v1958_v22, %v1329_v31  ;;  %v1821_v34 = vmin.f32 %v1820_v23, %v880_v32  ;;  %v1489_v35 = vpop.xlane.xlu1 %1488  ;;  %v882_v36 = vpop.f32.mrb[85].mxu0 }
 0x256   : > { %v1667_v37 = vmin.f32 %v1666_v30, %v1325_v24  ;;  %2065 = vst.msk [vmem:[#allocation2 + $0x28] sm:$0xff] %vm2059_vm1, %v1489_v35  ;;  %v1670_v38 = vmin.f32 %v880_v32, %v882_v36  ;;  %v1890_v39 = vmin.f32 %v1889_v27, %v882_v36  ;;  %v1331_v40 = vpop.f32.mrb[85].mxu1 }
 0x257   : > { %v2028_v41 = vmin.f32 %v2027_v29, %v1331_v40 }
 0x258   : > { %v1671_v42 = vmin.f32 %v1670_v38, %v1329_v31  ;;  %v1335_v43 = vpop.f32.mrb[86].mxu1  ;;  %1668 = vmin.xlane.f32.xlu1 %v1667_v37  ;;  %v886_v44 = vpop.f32.mrb[86].mxu0 }
 0x259   : > { %v1960_v45 = vmin.f32 %v1959_v33, %v1335_v43  ;;  %v1822_v46 = vmin.f32 %v1821_v34, %v886_v44  ;;  %v888_v47 = vpop.f32.mrb[87].mxu0  ;;  %v1337_v48 = vpop.f32.mrb[87].mxu1 }
 0x25a   : > { %v1672_v49 = vmin.f32 %v1671_v42, %v1331_v40  ;;  %v1675_v50 = vmin.f32 %v886_v44, %v888_v47  ;;  %v1891_v51 = vmin.f32 %v1890_v39, %v888_v47  ;;  %v2029_v52 = vmin.f32 %v2028_v41, %v1337_v48  ;;  %v1494_v53 = vpop.xlane.xlu0 %1493 }
 0x25b   : > { %2066 = vst.msk [vmem:[#allocation2 + $0x30] sm:$0xff] %vm2059_vm1, %v1494_v53 }
 0x25c   : > { %v1676_v54 = vmin.f32 %v1675_v50, %v1335_v43  ;;  %v1341_v55 = vpop.f32.mrb[88].mxu1  ;;  %1673 = vmin.xlane.f32.xlu0 %v1672_v49  ;;  %v892_v56 = vpop.f32.mrb[88].mxu0 }
 0x25d   : > { %v1961_v57 = vmin.f32 %v1960_v45, %v1341_v55  ;;  %v1823_v58 = vmin.f32 %v1822_v46, %v892_v56  ;;  %v1499_v59 = vpop.xlane.xlu1 %1498  ;;  %v894_v60 = vpop.f32.mrb[89].mxu0 }
 0x25e   : > { %v1677_v61 = vmin.f32 %v1676_v54, %v1337_v48  ;;  %2067 = vst.msk [vmem:[#allocation2 + $0x38] sm:$0xff] %vm2059_vm1, %v1499_v59  ;;  %v1680_v62 = vmin.f32 %v892_v56, %v894_v60  ;;  %v1343_v63 = vpop.f32.mrb[89].mxu1  ;;  %v1892_v1 = vmin.f32 %v1891_v51, %v894_v60 }
 0x25f   : > { %v2030_v2 = vmin.f32 %v2029_v52, %v1343_v63 }
 0x260   : > { %v1681_v3 = vmin.f32 %v1680_v62, %v1341_v55  ;;  %v1347_v5 = vpop.f32.mrb[90].mxu1  ;;  %1678 = vmin.xlane.f32.xlu1 %v1677_v61  ;;  %v898_v6 = vpop.f32.mrb[90].mxu0 }
 0x261   : > { %v1962_v7 = vmin.f32 %v1961_v57, %v1347_v5  ;;  %v1824_v8 = vmin.f32 %v1823_v58, %v898_v6  ;;  %v900_v9 = vpop.f32.mrb[91].mxu0  ;;  %v1349_v10 = vpop.f32.mrb[91].mxu1 }
 0x262   : > { %v1682_v11 = vmin.f32 %v1681_v3, %v1343_v63  ;;  %v1685_v4 = vmin.f32 %v898_v6, %v900_v9  ;;  %v1893_v12 = vmin.f32 %v1892_v1, %v900_v9  ;;  %v2031_v13 = vmin.f32 %v2030_v2, %v1349_v10  ;;  %v1504_v14 = vpop.xlane.xlu0 %1503 }
 0x263   : > { %2068 = vst.msk [vmem:[#allocation2 + $0x40] sm:$0xff] %vm2059_vm1, %v1504_v14 }
 0x264   : > { %v1686_v15 = vmin.f32 %v1685_v4, %v1347_v5  ;;  %v1353_v16 = vpop.f32.mrb[92].mxu1  ;;  %1683 = vmin.xlane.f32.xlu0 %v1682_v11  ;;  %v904_v17 = vpop.f32.mrb[92].mxu0 }
 0x265   : > { %v1963_v18 = vmin.f32 %v1962_v7, %v1353_v16  ;;  %v1825_v19 = vmin.f32 %v1824_v8, %v904_v17  ;;  %v1509_v20 = vpop.xlane.xlu1 %1508  ;;  %v906_v22 = vpop.f32.mrb[93].mxu0 }
 0x266   : > { %v1687_v23 = vmin.f32 %v1686_v15, %v1349_v10  ;;  %2069 = vst.msk [vmem:[#allocation2 + $0x48] sm:$0xff] %vm2059_vm1, %v1509_v20  ;;  %v1690_v21 = vmin.f32 %v904_v17, %v906_v22  ;;  %v1355_v24 = vpop.f32.mrb[93].mxu1  ;;  %v1894_v25 = vmin.f32 %v1893_v12, %v906_v22 }
 0x267   : > { %v2032_v26 = vmin.f32 %v2031_v13, %v1355_v24 }
 0x268   : > { %v1691_v27 = vmin.f32 %v1690_v21, %v1353_v16  ;;  %v1359_v28 = vpop.f32.mrb[94].mxu1  ;;  %1688 = vmin.xlane.f32.xlu1 %v1687_v23  ;;  %v910_v29 = vpop.f32.mrb[94].mxu0 }
 0x269   : > { %v1964_v30 = vmin.f32 %v1963_v18, %v1359_v28  ;;  %v1826_v31 = vmin.f32 %v1825_v19, %v910_v29  ;;  %v912_v32 = vpop.f32.mrb[95].mxu0  ;;  %v1361_v33 = vpop.f32.mrb[95].mxu1 }
 0x26a   : > { %v1692_v34 = vmin.f32 %v1691_v27, %v1355_v24  ;;  %v1695_v35 = vmin.f32 %v910_v29, %v912_v32  ;;  %v1895_v36 = vmin.f32 %v1894_v25, %v912_v32  ;;  %v2033_v37 = vmin.f32 %v2032_v26, %v1361_v33  ;;  %v1514_v38 = vpop.xlane.xlu0 %1513 }
 0x26b   : > { %2070 = vst.msk [vmem:[#allocation2 + $0x50] sm:$0xff] %vm2059_vm1, %v1514_v38 }
 0x26c   : > { %v1696_v39 = vmin.f32 %v1695_v35, %v1359_v28  ;;  %v1365_v40 = vpop.f32.mrb[96].mxu1  ;;  %1693 = vmin.xlane.f32.xlu0 %v1692_v34  ;;  %v916_v41 = vpop.f32.mrb[96].mxu0 }
 0x26d   : > { %v1965_v42 = vmin.f32 %v1964_v30, %v1365_v40  ;;  %v1827_v43 = vmin.f32 %v1826_v31, %v916_v41  ;;  %v1519_v44 = vpop.xlane.xlu1 %1518  ;;  %v918_v45 = vpop.f32.mrb[97].mxu0 }
 0x26e   : > { %v1697_v46 = vmin.f32 %v1696_v39, %v1361_v33  ;;  %2071 = vst.msk [vmem:[#allocation2 + $0x58] sm:$0xff] %vm2059_vm1, %v1519_v44  ;;  %v1700_v47 = vmin.f32 %v916_v41, %v918_v45  ;;  %v1367_v48 = vpop.f32.mrb[97].mxu1  ;;  %v1896_v49 = vmin.f32 %v1895_v36, %v918_v45 }
 0x26f   : > { %v2034_v50 = vmin.f32 %v2033_v37, %v1367_v48 }
 0x270   : > { %v1701_v51 = vmin.f32 %v1700_v47, %v1365_v40  ;;  %v1371_v52 = vpop.f32.mrb[98].mxu1  ;;  %1698 = vmin.xlane.f32.xlu1 %v1697_v46  ;;  %v922_v53 = vpop.f32.mrb[98].mxu0 }
 0x271   : > { %v1966_v54 = vmin.f32 %v1965_v42, %v1371_v52  ;;  %v1828_v55 = vmin.f32 %v1827_v43, %v922_v53  ;;  %v924_v56 = vpop.f32.mrb[99].mxu0  ;;  %v1373_v57 = vpop.f32.mrb[99].mxu1 }
 0x272   : > { %v1702_v58 = vmin.f32 %v1701_v51, %v1367_v48  ;;  %v1705_v59 = vmin.f32 %v922_v53, %v924_v56  ;;  %v1897_v60 = vmin.f32 %v1896_v49, %v924_v56  ;;  %v2035_v61 = vmin.f32 %v2034_v50, %v1373_v57  ;;  %v1524_v62 = vpop.xlane.xlu0 %1523 }
 0x273   : > { %2072 = vst.msk [vmem:[#allocation2 + $0x60] sm:$0xff] %vm2059_vm1, %v1524_v62 }
 0x274   : > { %v1706_v63 = vmin.f32 %v1705_v59, %v1371_v52  ;;  %v1377_v1 = vpop.f32.mrb[100].mxu1  ;;  %1703 = vmin.xlane.f32.xlu0 %v1702_v58  ;;  %v928_v2 = vpop.f32.mrb[100].mxu0 }
 0x275   : > { %v1967_v3 = vmin.f32 %v1966_v54, %v1377_v1  ;;  %v1829_v5 = vmin.f32 %v1828_v55, %v928_v2  ;;  %v1529_v6 = vpop.xlane.xlu1 %1528  ;;  %v930_v7 = vpop.f32.mrb[101].mxu0 }
 0x276   : > { %v1707_v8 = vmin.f32 %v1706_v63, %v1373_v57  ;;  %2073 = vst.msk [vmem:[#allocation2 + $0x68] sm:$0xff] %vm2059_vm1, %v1529_v6  ;;  %v1710_v9 = vmin.f32 %v928_v2, %v930_v7  ;;  %v1379_v10 = vpop.f32.mrb[101].mxu1  ;;  %v1898_v11 = vmin.f32 %v1897_v60, %v930_v7 }
 0x277   : > { %v2036_v4 = vmin.f32 %v2035_v61, %v1379_v10 }
 0x278   : > { %v1711_v12 = vmin.f32 %v1710_v9, %v1377_v1  ;;  %v1383_v13 = vpop.f32.mrb[102].mxu1  ;;  %1708 = vmin.xlane.f32.xlu1 %v1707_v8  ;;  %v934_v14 = vpop.f32.mrb[102].mxu0 }
 0x279   : > { %v1968_v15 = vmin.f32 %v1967_v3, %v1383_v13  ;;  %v1830_v16 = vmin.f32 %v1829_v5, %v934_v14  ;;  %v936_v17 = vpop.f32.mrb[103].mxu0  ;;  %v1385_v18 = vpop.f32.mrb[103].mxu1 }
 0x27a   : > { %v1712_v19 = vmin.f32 %v1711_v12, %v1379_v10  ;;  %v1715_v20 = vmin.f32 %v934_v14, %v936_v17  ;;  %v1899_v22 = vmin.f32 %v1898_v11, %v936_v17  ;;  %v2037_v23 = vmin.f32 %v2036_v4, %v1385_v18  ;;  %v1534_v21 = vpop.xlane.xlu0 %1533 }
 0x27b   : > { %2074 = vst.msk [vmem:[#allocation2 + $0x70] sm:$0xff] %vm2059_vm1, %v1534_v21 }
 0x27c   : > { %v1716_v24 = vmin.f32 %v1715_v20, %v1383_v13  ;;  %v1389_v25 = vpop.f32.mrb[104].mxu1  ;;  %1713 = vmin.xlane.f32.xlu0 %v1712_v19  ;;  %v940_v26 = vpop.f32.mrb[104].mxu0 }
 0x27d   : > { %v1969_v27 = vmin.f32 %v1968_v15, %v1389_v25  ;;  %v1831_v28 = vmin.f32 %v1830_v16, %v940_v26  ;;  %v1539_v29 = vpop.xlane.xlu1 %1538  ;;  %v942_v30 = vpop.f32.mrb[105].mxu0 }
 0x27e   : > { %v1717_v31 = vmin.f32 %v1716_v24, %v1385_v18  ;;  %2075 = vst.msk [vmem:[#allocation2 + $0x78] sm:$0xff] %vm2059_vm1, %v1539_v29  ;;  %v1720_v32 = vmin.f32 %v940_v26, %v942_v30  ;;  %v1391_v33 = vpop.f32.mrb[105].mxu1  ;;  %v1900_v34 = vmin.f32 %v1899_v22, %v942_v30 }
 0x27f   : > { %v2038_v35 = vmin.f32 %v2037_v23, %v1391_v33 }
 0x280   : > { %v1721_v36 = vmin.f32 %v1720_v32, %v1389_v25  ;;  %v1395_v37 = vpop.f32.mrb[106].mxu1  ;;  %1718 = vmin.xlane.f32.xlu1 %v1717_v31  ;;  %v946_v38 = vpop.f32.mrb[106].mxu0 }
 0x281   : > { %v1970_v39 = vmin.f32 %v1969_v27, %v1395_v37  ;;  %v1832_v40 = vmin.f32 %v1831_v28, %v946_v38  ;;  %v948_v41 = vpop.f32.mrb[107].mxu0  ;;  %v1397_v42 = vpop.f32.mrb[107].mxu1 }
 0x282   : > { %v1722_v43 = vmin.f32 %v1721_v36, %v1391_v33  ;;  %v1725_v44 = vmin.f32 %v946_v38, %v948_v41  ;;  %v1901_v45 = vmin.f32 %v1900_v34, %v948_v41  ;;  %v2039_v46 = vmin.f32 %v2038_v35, %v1397_v42  ;;  %v1544_v47 = vpop.xlane.xlu0 %1543 }
 0x283   : > { %2076 = vst.msk [vmem:[#allocation2 + $0x80] sm:$0xff] %vm2059_vm1, %v1544_v47 }
 0x284   : > { %v1726_v48 = vmin.f32 %v1725_v44, %v1395_v37  ;;  %v1401_v49 = vpop.f32.mrb[108].mxu1  ;;  %1723 = vmin.xlane.f32.xlu0 %v1722_v43  ;;  %v952_v50 = vpop.f32.mrb[108].mxu0 }
 0x285   : > { %v1971_v51 = vmin.f32 %v1970_v39, %v1401_v49  ;;  %v1833_v52 = vmin.f32 %v1832_v40, %v952_v50  ;;  %v1549_v53 = vpop.xlane.xlu1 %1548  ;;  %v954_v54 = vpop.f32.mrb[109].mxu0 }
 0x286   : > { %v1727_v55 = vmin.f32 %v1726_v48, %v1397_v42  ;;  %2077 = vst.msk [vmem:[#allocation2 + $0x88] sm:$0xff] %vm2059_vm1, %v1549_v53  ;;  %v1730_v56 = vmin.f32 %v952_v50, %v954_v54  ;;  %v1403_v57 = vpop.f32.mrb[109].mxu1  ;;  %v1902_v58 = vmin.f32 %v1901_v45, %v954_v54 }
 0x287   : > { %v2040_v59 = vmin.f32 %v2039_v46, %v1403_v57 }
 0x288   : > { %v1731_v60 = vmin.f32 %v1730_v56, %v1401_v49  ;;  %v1407_v61 = vpop.f32.mrb[110].mxu1  ;;  %1728 = vmin.xlane.f32.xlu1 %v1727_v55  ;;  %v958_v62 = vpop.f32.mrb[110].mxu0 }
 0x289   : > { %v1972_v63 = vmin.f32 %v1971_v51, %v1407_v61  ;;  %v1834_v1 = vmin.f32 %v1833_v52, %v958_v62  ;;  %v960_v2 = vpop.f32.mrb[111].mxu0  ;;  %v1409_v3 = vpop.f32.mrb[111].mxu1 }
 0x28a   : > { %v1732_v5 = vmin.f32 %v1731_v60, %v1403_v57  ;;  %v1735_v6 = vmin.f32 %v958_v62, %v960_v2  ;;  %v1903_v7 = vmin.f32 %v1902_v58, %v960_v2  ;;  %v2041_v8 = vmin.f32 %v2040_v59, %v1409_v3  ;;  %v1554_v9 = vpop.xlane.xlu0 %1553 }
 0x28b   : > { %2078 = vst.msk [vmem:[#allocation2 + $0x90] sm:$0xff] %vm2059_vm1, %v1554_v9 }
 0x28c   : > { %v1736_v10 = vmin.f32 %v1735_v6, %v1407_v61  ;;  %v1413_v11 = vpop.f32.mrb[112].mxu1  ;;  %1733 = vmin.xlane.f32.xlu0 %v1732_v5  ;;  %v964_v4 = vpop.f32.mrb[112].mxu0 }
 0x28d   : > { %v1973_v12 = vmin.f32 %v1972_v63, %v1413_v11  ;;  %v1835_v13 = vmin.f32 %v1834_v1, %v964_v4  ;;  %v1559_v14 = vpop.xlane.xlu1 %1558  ;;  %v966_v15 = vpop.f32.mrb[113].mxu0 }
 0x28e   : > { %v1737_v16 = vmin.f32 %v1736_v10, %v1409_v3  ;;  %2079 = vst.msk [vmem:[#allocation2 + $0x98] sm:$0xff] %vm2059_vm1, %v1559_v14  ;;  %v1740_v17 = vmin.f32 %v964_v4, %v966_v15  ;;  %v1415_v18 = vpop.f32.mrb[113].mxu1  ;;  %v1904_v19 = vmin.f32 %v1903_v7, %v966_v15 }
 0x28f   : > { %v2042_v20 = vmin.f32 %v2041_v8, %v1415_v18 }
 0x290   : > { %v1741_v22 = vmin.f32 %v1740_v17, %v1413_v11  ;;  %v1419_v23 = vpop.f32.mrb[114].mxu1  ;;  %1738 = vmin.xlane.f32.xlu1 %v1737_v16  ;;  %v970_v21 = vpop.f32.mrb[114].mxu0 }
 0x291   : > { %v1974_v24 = vmin.f32 %v1973_v12, %v1419_v23  ;;  %v1836_v25 = vmin.f32 %v1835_v13, %v970_v21  ;;  %v972_v26 = vpop.f32.mrb[115].mxu0  ;;  %v1421_v27 = vpop.f32.mrb[115].mxu1 }
 0x292   : > { %v1742_v28 = vmin.f32 %v1741_v22, %v1415_v18  ;;  %v1745_v29 = vmin.f32 %v970_v21, %v972_v26  ;;  %v1905_v30 = vmin.f32 %v1904_v19, %v972_v26  ;;  %v2043_v31 = vmin.f32 %v2042_v20, %v1421_v27  ;;  %v1564_v32 = vpop.xlane.xlu0 %1563 }
 0x293   : > { %2080 = vst.msk [vmem:[#allocation2 + $0xa0] sm:$0xff] %vm2059_vm1, %v1564_v32 }
 0x294   : > { %v1746_v33 = vmin.f32 %v1745_v29, %v1419_v23  ;;  %v1425_v34 = vpop.f32.mrb[116].mxu1  ;;  %1743 = vmin.xlane.f32.xlu0 %v1742_v28  ;;  %v976_v35 = vpop.f32.mrb[116].mxu0 }
 0x295   : > { %v1975_v36 = vmin.f32 %v1974_v24, %v1425_v34  ;;  %v1837_v37 = vmin.f32 %v1836_v25, %v976_v35  ;;  %v1569_v38 = vpop.xlane.xlu1 %1568  ;;  %v978_v39 = vpop.f32.mrb[117].mxu0 }
 0x296   : > { %v1747_v40 = vmin.f32 %v1746_v33, %v1421_v27  ;;  %2081 = vst.msk [vmem:[#allocation2 + $0xa8] sm:$0xff] %vm2059_vm1, %v1569_v38  ;;  %v1750_v41 = vmin.f32 %v976_v35, %v978_v39  ;;  %v1427_v42 = vpop.f32.mrb[117].mxu1  ;;  %v1906_v43 = vmin.f32 %v1905_v30, %v978_v39 }
 0x297   : > { %v2044_v44 = vmin.f32 %v2043_v31, %v1427_v42 }
 0x298   : > { %v1751_v45 = vmin.f32 %v1750_v41, %v1425_v34  ;;  %v1431_v46 = vpop.f32.mrb[118].mxu1  ;;  %1748 = vmin.xlane.f32.xlu1 %v1747_v40  ;;  %v982_v47 = vpop.f32.mrb[118].mxu0 }
 0x299   : > { %v1976_v48 = vmin.f32 %v1975_v36, %v1431_v46  ;;  %v1838_v49 = vmin.f32 %v1837_v37, %v982_v47  ;;  %v984_v50 = vpop.f32.mrb[119].mxu0  ;;  %v1433_v51 = vpop.f32.mrb[119].mxu1 }
 0x29a   : > { %v1752_v52 = vmin.f32 %v1751_v45, %v1427_v42  ;;  %v1755_v53 = vmin.f32 %v982_v47, %v984_v50  ;;  %v1907_v54 = vmin.f32 %v1906_v43, %v984_v50  ;;  %v2045_v55 = vmin.f32 %v2044_v44, %v1433_v51  ;;  %v1574_v56 = vpop.xlane.xlu0 %1573  ;;  %v2425_v0 = vld [vmem:[#allocation2 + $0xa0] sm:$0xff] }
 0x29b   : > { %2082 = vst.msk [vmem:[#allocation2 + $0xb0] sm:$0xff] %vm2059_vm1, %v1574_v56 }
 0x29c   : > { %v1756_v57 = vmin.f32 %v1755_v53, %v1431_v46  ;;  %v1437_v58 = vpop.f32.mrb[120].mxu1  ;;  %1753 = vmin.xlane.f32.xlu0 %v1752_v52  ;;  %v988_v59 = vpop.f32.mrb[120].mxu0  ;;  %v2333_v53 = vlaneseq }
 0x29d   : > { %v1977_v60 = vmin.f32 %v1976_v48, %v1437_v58  ;;  %v1839_v61 = vmin.f32 %v1838_v49, %v988_v59  ;;  %v1579_v62 = vpop.xlane.xlu1 %1578  ;;  %v990_v63 = vpop.f32.mrb[121].mxu0 }
 0x29e   : > { %v1757_v1 = vmin.f32 %v1756_v57, %v1433_v51  ;;  %2083 = vst.msk [vmem:[#allocation2 + $0xb8] sm:$0xff] %vm2059_vm1, %v1579_v62  ;;  %v1760_v2 = vmin.f32 %v988_v59, %v990_v63  ;;  %v1439_v3 = vpop.f32.mrb[121].mxu1  ;;  %v1908_v5 = vmin.f32 %v1907_v54, %v990_v63  ;;  %v3209_v51 = vmov 1966171168  }
 0x29f   : > { %v2046_v6 = vmin.f32 %v2045_v55, %v1439_v3  ;;  %v2331_v52 = vunpack.c.l.s4 %v3209_v51  ;;  %vm2357_vm2 = vcmp.lt.s32.totalorder %v2333_v53, 512 }
 0x2a0   : > { %v1761_v7 = vmin.f32 %v1760_v2, %v1437_v58  ;;  %v1443_v8 = vpop.f32.mrb[122].mxu1  ;;  %1758 = vmin.xlane.f32.xlu1 %v1757_v1  ;;  %v994_v9 = vpop.f32.mrb[122].mxu0  ;;  %v2334_v2 = vshrl.u32 %v2333_v53, 7 }
 0x2a1   : > { %v1978_v10 = vmin.f32 %v1977_v60, %v1443_v8  ;;  %v1840_v11 = vmin.f32 %v1839_v61, %v994_v9  ;;  %v996_v4 = vpop.f32.mrb[123].mxu0  ;;  %v1445_v12 = vpop.f32.mrb[123].mxu1  ;;  %v2332_v1 = vunpack.c.0.s8 %v2331_v52 }
 0x2a2   : > { %v1762_v13 = vmin.f32 %v1761_v7, %v1439_v3  ;;  %v1765_v14 = vmin.f32 %v994_v9, %v996_v4  ;;  %v1909_v15 = vmin.f32 %v1908_v5, %v996_v4  ;;  %v2047_v16 = vmin.f32 %v2046_v6, %v1445_v12  ;;  %v1584_v17 = vpop.xlane.xlu0 %1583 }
 0x2a3   : > { %2084 = vst.msk [vmem:[#allocation2 + $0xc0] sm:$0xff] %vm2059_vm1, %v1584_v17 }
 0x2a4   : > { %v1766_v18 = vmin.f32 %v1765_v14, %v1443_v8  ;;  %v1449_v19 = vpop.f32.mrb[124].mxu1  ;;  %1763 = vmin.xlane.f32.xlu0 %v1762_v13  ;;  %v1000_v20 = vpop.f32.mrb[124].mxu0 }
 0x2a5   : > { %v1979_v22 = vmin.f32 %v1978_v10, %v1449_v19  ;;  %v1841_v23 = vmin.f32 %v1840_v11, %v1000_v20  ;;  %v1589_v21 = vpop.xlane.xlu1 %1588  ;;  %v1002_v24 = vpop.f32.mrb[125].mxu0 }
 0x2a6   : > { %v1767_v25 = vmin.f32 %v1766_v18, %v1445_v12  ;;  %2085 = vst.msk [vmem:[#allocation2 + $0xc8] sm:$0xff] %vm2059_vm1, %v1589_v21  ;;  %v1770_v26 = vmin.f32 %v1000_v20, %v1002_v24  ;;  %v1451_v27 = vpop.f32.mrb[125].mxu1  ;;  %v1910_v28 = vmin.f32 %v1909_v15, %v1002_v24  ;;  %v2335_v12 = vsub.s32 %v2332_v1, %v2334_v2  ;;  %v2406_v24 = vld [vmem:[#allocation2 + $0x8] sm:$0xff] }
 0x2a7   : > { %v2048_v29 = vmin.f32 %v2047_v16, %v1451_v27 }
 0x2a8   : > { %v1771_v30 = vmin.f32 %v1770_v26, %v1449_v19  ;;  %v1455_v31 = vpop.f32.mrb[126].mxu1  ;;  %1768 = vmin.xlane.f32.xlu1 %v1767_v25  ;;  %v1006_v32 = vpop.f32.mrb[126].mxu0  ;;  %v2405_v25 = vld [vmem:[#allocation2] sm:$0xff]  ;;  %v2407_v26 = vld [vmem:[#allocation2 + $0x10] sm:$0xff] }
 0x2a9   : > { %v1980_v33 = vmin.f32 %v1979_v22, %v1455_v31  ;;  %v1842_v34 = vmin.f32 %v1841_v23, %v1006_v32  ;;  %v1008_v35 = vpop.f32.mrb[127].mxu0  ;;  %v1457_v36 = vpop.f32.mrb[127].mxu1  ;;  %v3210_v23 = vmov 0  }
 0x2aa   : > { %v1772_v37 = vmin.f32 %v1771_v30, %v1451_v27  ;;  %v1775_v38 = vmin.f32 %v1006_v32, %v1008_v35  ;;  %v1911_v39 = vmin.f32 %v1910_v28, %v1008_v35  ;;  %v2049_v40 = vmin.f32 %v2048_v29, %v1457_v36  ;;  %v1594_v41 = vpop.xlane.xlu0 %1593  ;;  %3057 = vset.pattern.permute.xlu0 %v3210_v23  ;;  %v2408_v29 = vld [vmem:[#allocation2 + $0x18] sm:$0xff]  ;;  %v2417_v23 = vld [vmem:[#allocation2 + $0x60] sm:$0xff] }
 0x2ab   : > { %v1981_v42 = vrot.slane %v1980_v33, 4  ;;  %v1843_v43 = vrot.slane %v1842_v34, 4  ;;  %2086 = vst.msk [vmem:[#allocation2 + $0xd0] sm:$0xff] %vm2059_vm1, %v1594_v41  ;;  %v2470_v28 = vmax.f32 %v2406_v24, 0.0  ;;  %v2686_v30 = vsub.s32 0, %v2334_v2 }
 0x2ac   : > { %v1912_v44 = vrot.slane %v1911_v39, 4  ;;  %v1776_v45 = vmin.f32 %v1775_v38, %v1455_v31  ;;  %v2050_v46 = vrot.slane %v2049_v40, 4  ;;  %1773 = vmin.xlane.f32.xlu0 %v1772_v37  ;;  %v2690_v31 = vsub.s32 1, %v2334_v2 }
 0x2ad   : > { %v1982_v47 = vmin.f32 %v1980_v33, %v1981_v42  ;;  %v1844_v48 = vmin.f32 %v1842_v34, %v1843_v43  ;;  %v1599_v49 = vpop.xlane.xlu1 %1598  ;;  %v2694_v32 = vsub.s32 2, %v2334_v2  ;;  %v2469_v33 = vmax.f32 %v2405_v25, 0.0  ;;  %v2410_v42 = vld [vmem:[#allocation2 + $0x28] sm:$0xff] }
 0x2ae   : > { %v1913_v50 = vmin.f32 %v1911_v39, %v1912_v44  ;;  %v1777_v54 = vmin.f32 %v1776_v45, %v1457_v36  ;;  %2087 = vst.msk [vmem:[#allocation2 + $0xd8] sm:$0xff] %vm2059_vm1, %v1599_v49  ;;  %v2051_v57 = vmin.f32 %v2049_v40, %v2050_v46  ;;  %v2471_v34 = vmax.f32 %v2407_v26, 0.0  ;;  %v2409_v36 = vld [vmem:[#allocation2 + $0x20] sm:$0xff] }
 0x2af   : > { %v1983_v55 = vrot.slane %v1982_v47, 2  ;;  %v1845_v56 = vrot.slane %v1844_v48, 2  ;;  %v2698_v39 = vsub.s32 3, %v2334_v2  ;;  %v2536_v40 = vsel %vm2059_vm1, %v2470_v28, 0.0  ;;  %v2413_v2 = vld [vmem:[#allocation2 + $0x40] sm:$0xff] }
 0x2b0   : > { %v1914_v58 = vrot.slane %v1913_v50, 2  ;;  %1778 = vmin.xlane.f32.xlu1 %v1777_v54  ;;  %v2052_v61 = vrot.slane %v2051_v57, 2  ;;  %v2472_v41 = vmax.f32 %v2408_v29, 0.0  ;;  %v2535_v46 = vsel %vm2059_vm1, %v2469_v33, 0.0 }
 0x2b1   : > { %v1984_v59 = vmin.f32 %v1982_v47, %v1983_v55  ;;  %v1846_v60 = vmin.f32 %v1844_v48, %v1845_v56  ;;  %v1604_v62 = vpop.xlane.xlu0 %1603  ;;  %v2538_v47 = vsel %vm2059_vm1, %v2471_v34, 0.0  ;;  %v2473_v48 = vmax.f32 %v2409_v36, 0.0  ;;  %v2420_v36 = vld [vmem:[#allocation2 + $0x78] sm:$0xff] }
 0x2b2   : > { %v1915_v63 = vmin.f32 %v1913_v50, %v1914_v58  ;;  %2088 = vst.msk [vmem:[#allocation2 + $0xe0] sm:$0xff] %vm2059_vm1, %v1604_v62  ;;  %v2053_v6 = vmin.f32 %v2051_v57, %v2052_v61  ;;  %v2537_v49 = vadd.f32 %v2536_v40, %v2535_v46  ;;  %v2411_v50 = vld [vmem:[#allocation2 + $0x30] sm:$0xff]  ;;  %v2540_v55 = vsel %vm2059_vm1, %v2472_v41, 0.0  ;;  %v2421_v40 = vld [vmem:[#allocation2 + $0x80] sm:$0xff] }
 0x2b3   : > { %v1985_v3 = vrot.slane %v1984_v59, 1  ;;  %v1847_v5 = vrot.slane %v1846_v60, 1  ;;  %v2474_v56 = vmax.f32 %v2410_v42, 0.0  ;;  %v2542_v61 = vsel %vm2059_vm1, %v2473_v48, 0.0 }
 0x2b4   : > { %v1916_v7 = vrot.slane %v1915_v63, 1  ;;  %v2054_v10 = vrot.slane %v2053_v6, 1  ;;  %v2539_v58 = vadd.f32 %v2538_v47, %v2537_v49  ;;  %v2475_v62 = vmax.f32 %v2411_v50, 0.0  ;;  %v2423_v49 = vld [vmem:[#allocation2 + $0x90] sm:$0xff] }
 0x2b5   : > { %v1986_v8 = vmin.f32 %v1984_v59, %v1985_v3  ;;  %v1848_v9 = vmin.f32 %v1846_v60, %v1847_v5  ;;  %v1609_v11 = vpop.xlane.xlu1 %1608  ;;  %v2412_v59 = vld [vmem:[#allocation2 + $0x38] sm:$0xff]  ;;  %v2481_v29 = vmax.f32 %v2417_v23, 0.0  ;;  %v2485_v47 = vmax.f32 %v2421_v40, 0.0 }
 0x2b6   : > { %v1917_v4 = vmin.f32 %v1915_v63, %v1916_v7  ;;  %2089 = vst.msk [vmem:[#allocation2 + $0xe8] sm:$0xff] %vm2059_vm1, %v1609_v11  ;;  %v2055_v13 = vmin.f32 %v2053_v6, %v2054_v10  ;;  %v2541_v1 = vadd.f32 %v2540_v55, %v2539_v58  ;;  %v2544_v6 = vsel %vm2059_vm1, %v2474_v56, 0.0  ;;  %v2414_v10 = vld [vmem:[#allocation2 + $0x48] sm:$0xff] }
 0x2b7   : > { %v2476_v7 = vmax.f32 %v2412_v59, 0.0  ;;  %v2546_v11 = vsel %vm2059_vm1, %v2475_v62, 0.0  ;;  %v2566_v55 = vsel %vm2059_vm1, %v2485_v47, 0.0  ;;  %v2487_v56 = vmax.f32 %v2423_v49, 0.0  ;;  %v2426_v62 = vld [vmem:[#allocation2 + $0xa8] sm:$0xff] }
 0x2b8   : > { %v2328_v14 = vcombine.low %v1848_v9, %v1917_v4  ;;  %v2329_v15 = vcombine.low %v1986_v8, %v2055_v13  ;;  %v2543_v9 = vadd.f32 %v2542_v61, %v2541_v1  ;;  %v2477_v4 = vmax.f32 %v2413_v2, 0.0  ;;  %v2415_v13 = vld [vmem:[#allocation2 + $0x50] sm:$0xff] }
 0x2b9   : > { %v1614_v16 = vpop.xlane.xlu0 %1613  ;;  %v2489_v1 = vmax.f32 %v2425_v0, 0.0 }
 0x2ba   : > { %v2336_v17 = vrot.slane %v2328_v14, %v2335_v12  ;;  %2090 = vst.msk [vmem:[#allocation2 + $0xf0] sm:$0xff] %vm2059_vm1, %v1614_v16  ;;  %v2343_v18 = vrot.slane %v2329_v15, %v2335_v12  ;;  %v2548_v15 = vsel %vm2059_vm1, %v2476_v7, 0.0  ;;  %v2478_v16 = vmax.f32 %v2414_v10, 0.0 }
 0x2bb   : > { %v2490_v7 = vmax.f32 %v2426_v62, 0.0  ;;  %v2574_v10 = vsel %vm2059_vm1, %v2489_v1, 0.0 }
 0x2bc   : > { %v2344_v19 = vcombine.low %v2336_v17, %v2343_v18  ;;  %v2416_v18 = vld [vmem:[#allocation2 + $0x58] sm:$0xff]  ;;  %v2552_v24 = vsel %vm2059_vm1, %v2478_v16, 0.0 }
 0x2bd   : > { %v1619_v20 = vpop.xlane.xlu1 %1618  ;;  %v2480_v25 = vmax.f32 %v2416_v18, 0.0 }
 0x2be   : > { %2091 = vst.msk [vmem:[#allocation2 + $0xf8] sm:$0xff] %vm2059_vm1, %v1619_v20  ;;  %v2351_v22 = vrot.slane %v2344_v19, %v2335_v12  ;;  %v2545_v12 = vadd.f32 %v2544_v6, %v2543_v9  ;;  %v2550_v19 = vsel %vm2059_vm1, %v2477_v4, 0.0  ;;  %v2479_v20 = vmax.f32 %v2415_v13, 0.0  ;;  %v2428_v9 = vld [vmem:[#allocation2 + $0xb8] sm:$0xff] }
 0x2bf   : > { %v2556_v33 = vsel %vm2059_vm1, %v2480_v25, 0.0 }
 0x2c0   : > { %2359 = vst.msk [vmem:[#allocation3] sm:$0xf] %vm2357_vm2, %v2351_v22  ;;  %v2547_v17 = vadd.f32 %v2546_v11, %v2545_v12  ;;  %v2554_v28 = vsel %vm2059_vm1, %v2479_v20, 0.0  ;;  %v2429_v12 = vld [vmem:[#allocation2 + $0xc0] sm:$0xff] }
 0x2c1   : > { %v1624_v21 = vpop.xlane.xlu0 %1623 }
 0x2c2   : > { %2092 = vst.msk [vmem:[#allocation2 + $0x100] sm:$0xff] %vm2059_vm1, %v1624_v21  ;;  %v2549_v22 = vadd.f32 %v2548_v15, %v2547_v17  ;;  %v2492_v15 = vmax.f32 %v2428_v9, 0.0  ;;  %v2430_v17 = vld [vmem:[#allocation2 + $0xc8] sm:$0xff] }
 0x2c4   : > { %v2551_v26 = vadd.f32 %v2550_v19, %v2549_v22  ;;  %v2493_v19 = vmax.f32 %v2429_v12, 0.0  ;;  %v2431_v22 = vld [vmem:[#allocation2 + $0xd0] sm:$0xff] }
 0x2c5   : > { %v1629_v27 = vpop.xlane.xlu1 %1628 }
 0x2c6   : > { %2093 = vst.msk [vmem:[#allocation2 + $0x108] sm:$0xff] %vm2059_vm1, %v1629_v27  ;;  %v2418_v27 = vld [vmem:[#allocation2 + $0x68] sm:$0xff] }
 0x2c7   : > { %v2680_v35 = vld [vmem:[#allocation3] sm:$0xf]  ;;  %v2482_v34 = vmax.f32 %v2418_v27, 0.0  ;;  %v2582_v27 = vsel %vm2059_vm1, %v2493_v19, 0.0 }
 0x2c8   : > { %v2681_v38 = vmax.f32 %v2680_v35, 0.0 }
 0x2c9   : > { %v1634_v37 = vpop.xlane.xlu0 %1633  ;;  %v2560_v42 = vsel %vm2059_vm1, %v2482_v34, 0.0 }
 0x2ca   : > { %2094 = vst.msk [vmem:[#allocation2 + $0x110] sm:$0xff] %vm2059_vm1, %v1634_v37  ;;  %v2687_v43 = vrot.slane %v2681_v38, %v2686_v30  ;;  %v2691_v44 = vrot.slane %v2681_v38, %v2690_v31  ;;  %v2695_v45 = vrot.slane %v2681_v38, %v2694_v32  ;;  %v2699_v52 = vrot.slane %v2681_v38, %v2698_v39  ;;  %v2419_v31 = vld [vmem:[#allocation2 + $0x70] sm:$0xff] }
 0x2cb   : > { %v2553_v30 = vadd.f32 %v2552_v24, %v2551_v26  ;;  %v2558_v37 = vsel %vm2059_vm1, %v2481_v29, 0.0  ;;  %v2483_v38 = vmax.f32 %v2419_v31, 0.0  ;;  %v2494_v24 = vmax.f32 %v2430_v17, 0.0  ;;  %v2432_v26 = vld [vmem:[#allocation2 + $0xd8] sm:$0xff] }
 0x2cc   : > { %v2705_v53 = vsel %vm2704_vm3, %v2687_v43, 0.0  ;;  %v2706_v54 = vsel %vm2704_vm3, %v2691_v44, 0.0  ;;  %v2708_v60 = vsel %vm2704_vm3, %v2695_v45, 0.0  ;;  %v2710_v5 = vsel %vm2704_vm3, %v2699_v52, 0.0  ;;  %v2422_v45 = vld [vmem:[#allocation2 + $0x88] sm:$0xff] }
 0x2cd   : > { %v1639_v51 = vpop.xlane.xlu1 %1638  ;;  %v2707_v57 = vadd.f32 %v2706_v54, %v2705_v53  ;;  %v2555_v35 = vadd.f32 %v2554_v28, %v2553_v30  ;;  %v2484_v43 = vmax.f32 %v2420_v36, 0.0  ;;  %v2562_v46 = vsel %vm2059_vm1, %v2483_v38, 0.0  ;;  %v2424_v54 = vld [vmem:[#allocation2 + $0x98] sm:$0xff]  ;;  %v2433_v30 = vld [vmem:[#allocation2 + $0xe0] sm:$0xff] }
 0x2ce   : > { %2095 = vst.msk [vmem:[#allocation2 + $0x118] sm:$0xff] %vm2059_vm1, %v1639_v51  ;;  %v2486_v52 = vmax.f32 %v2422_v45, 0.0  ;;  %v2495_v28 = vmax.f32 %v2431_v22, 0.0 }
 0x2cf   : > { %v2709_v63 = vadd.f32 %v2708_v60, %v2707_v57  ;;  %v2557_v39 = vadd.f32 %v2556_v33, %v2555_v35  ;;  %v2564_v51 = vsel %vm2059_vm1, %v2484_v43, 0.0  ;;  %v2488_v60 = vmax.f32 %v2424_v54, 0.0  ;;  %v2434_v35 = vld [vmem:[#allocation2 + $0xe8] sm:$0xff] }
 0x2d0   : > { %v2568_v59 = vsel %vm2059_vm1, %v2486_v52, 0.0  ;;  %v2496_v33 = vmax.f32 %v2432_v26, 0.0  ;;  %v2586_v36 = vsel %vm2059_vm1, %v2495_v28, 0.0 }
 0x2d1   : > { %v1644_v3 = vpop.xlane.xlu0 %1643  ;;  %v2711_v8 = vadd.f32 %v2710_v5, %v2709_v63  ;;  %v2559_v44 = vadd.f32 %v2558_v37, %v2557_v39  ;;  %v2570_v63 = vsel %vm2059_vm1, %v2487_v56, 0.0  ;;  %v2572_v6 = vsel %vm2059_vm1, %v2488_v60, 0.0  ;;  %v2435_v39 = vld [vmem:[#allocation2 + $0xf0] sm:$0xff] }
 0x2d2   : > { %2096 = vst.msk [vmem:[#allocation2 + $0x120] sm:$0xff] %vm2059_vm1, %v1644_v3  ;;  %v2427_v3 = vld [vmem:[#allocation2 + $0xb0] sm:$0xff]  ;;  %v2497_v37 = vmax.f32 %v2433_v30, 0.0 }
 0x2d3   : > { %2712 = vadd.xlane.f32.xlu1 %v2711_v8  ;;  %v2561_v48 = vadd.f32 %v2560_v42, %v2559_v44  ;;  %v2491_v11 = vmax.f32 %v2427_v3, 0.0  ;;  %v2498_v42 = vmax.f32 %v2434_v35, 0.0  ;;  %v2436_v44 = vld [vmem:[#allocation2 + $0xf8] sm:$0xff] }
 0x2d4   : > { %v2590_v45 = vsel %vm2059_vm1, %v2497_v37, 0.0 }
 0x2d5   : > { %v1649_v14 = vpop.xlane.xlu1 %1648  ;;  %v2563_v53 = vadd.f32 %v2562_v46, %v2561_v48  ;;  %v2578_v18 = vsel %vm2059_vm1, %v2491_v11, 0.0  ;;  %v2499_v46 = vmax.f32 %v2435_v39, 0.0  ;;  %v2437_v48 = vld [vmem:[#allocation2 + $0x100] sm:$0xff] }
 0x2d6   : > { %2097 = vst.msk [vmem:[#allocation2 + $0x128] sm:$0xff] %vm2059_vm1, %v1649_v14  ;;  %v2576_v14 = vsel %vm2059_vm1, %v2490_v7, 0.0 }
 0x2d7   : > { %v2565_v57 = vadd.f32 %v2564_v51, %v2563_v53  ;;  %v2500_v51 = vmax.f32 %v2436_v44, 0.0  ;;  %v2438_v53 = vld [vmem:[#allocation2 + $0x108] sm:$0xff]  ;;  %v2594_v54 = vsel %vm2059_vm1, %v2499_v46, 0.0 }
 0x2d9   : > { %v1654_v21 = vpop.xlane.xlu0 %1653  ;;  %v2567_v61 = vadd.f32 %v2566_v55, %v2565_v57  ;;  %v2501_v55 = vmax.f32 %v2437_v48, 0.0  ;;  %v2439_v57 = vld [vmem:[#allocation2 + $0x110] sm:$0xff] }
 0x2da   : > { %2098 = vst.msk [vmem:[#allocation2 + $0x130] sm:$0xff] %vm2059_vm1, %v1654_v21  ;;  %v2580_v21 = vsel %vm2059_vm1, %v2492_v15, 0.0 }
 0x2db   : > { %v2569_v2 = vadd.f32 %v2568_v59, %v2567_v61  ;;  %v2502_v59 = vmax.f32 %v2438_v53, 0.0  ;;  %v2440_v61 = vld [vmem:[#allocation2 + $0x118] sm:$0xff]  ;;  %v2598_v62 = vsel %vm2059_vm1, %v2501_v55, 0.0 }
 0x2dd   : > { %v1659_v32 = vpop.xlane.xlu1 %1658  ;;  %v2571_v8 = vadd.f32 %v2570_v63, %v2569_v2  ;;  %v2503_v63 = vmax.f32 %v2439_v57, 0.0  ;;  %v2441_v2 = vld [vmem:[#allocation2 + $0x120] sm:$0xff] }
 0x2de   : > { %2099 = vst.msk [vmem:[#allocation2 + $0x138] sm:$0xff] %vm2059_vm1, %v1659_v32  ;;  %v2584_v32 = vsel %vm2059_vm1, %v2494_v24, 0.0 }
 0x2df   : > { %v2573_v4 = vadd.f32 %v2572_v6, %v2571_v8  ;;  %v2504_v6 = vmax.f32 %v2440_v61, 0.0  ;;  %v2442_v8 = vld [vmem:[#allocation2 + $0x128] sm:$0xff]  ;;  %v2602_v9 = vsel %vm2059_vm1, %v2503_v63, 0.0 }
 0x2e1   : > { %v1664_v41 = vpop.xlane.xlu0 %1663  ;;  %v2575_v16 = vadd.f32 %v2574_v10, %v2573_v4  ;;  %v2505_v10 = vmax.f32 %v2441_v2, 0.0  ;;  %v2443_v4 = vld [vmem:[#allocation2 + $0x130] sm:$0xff] }
 0x2e2   : > { %2100 = vst.msk [vmem:[#allocation2 + $0x140] sm:$0xff] %vm2059_vm1, %v1664_v41  ;;  %v2588_v41 = vsel %vm2059_vm1, %v2496_v33, 0.0 }
 0x2e3   : > { %v2577_v20 = vadd.f32 %v2576_v14, %v2575_v16  ;;  %v2506_v14 = vmax.f32 %v2442_v8, 0.0  ;;  %v2606_v17 = vsel %vm2059_vm1, %v2505_v10, 0.0 }
 0x2e5   : > { %v1669_v50 = vpop.xlane.xlu1 %1668  ;;  %v2579_v25 = vadd.f32 %v2578_v18, %v2577_v20  ;;  %v2444_v16 = vld [vmem:[#allocation2 + $0x138] sm:$0xff]  ;;  %v2507_v18 = vmax.f32 %v2443_v4, 0.0 }
 0x2e6   : > { %2101 = vst.msk [vmem:[#allocation2 + $0x148] sm:$0xff] %vm2059_vm1, %v1669_v50  ;;  %v2592_v50 = vsel %vm2059_vm1, %v2498_v42, 0.0 }
 0x2e7   : > { %v2581_v29 = vadd.f32 %v2580_v21, %v2579_v25  ;;  %v2508_v21 = vmax.f32 %v2444_v16, 0.0  ;;  %v2610_v26 = vsel %vm2059_vm1, %v2507_v18, 0.0 }
 0x2e9   : > { %v1674_v58 = vpop.xlane.xlu0 %1673  ;;  %v2583_v34 = vadd.f32 %v2582_v27, %v2581_v29  ;;  %v2445_v20 = vld [vmem:[#allocation2 + $0x140] sm:$0xff] }
 0x2ea   : > { %2102 = vst.msk [vmem:[#allocation2 + $0x150] sm:$0xff] %vm2059_vm1, %v1674_v58  ;;  %v2596_v58 = vsel %vm2059_vm1, %v2500_v51, 0.0  ;;  %v2509_v27 = vmax.f32 %v2445_v20, 0.0 }
 0x2eb   : > { %v2585_v38 = vadd.f32 %v2584_v32, %v2583_v34 }
 0x2ec   : > { %v2614_v35 = vsel %vm2059_vm1, %v2509_v27, 0.0 }
 0x2ed   : > { %v1679_v5 = vpop.xlane.xlu1 %1678  ;;  %v2587_v43 = vadd.f32 %v2586_v36, %v2585_v38  ;;  %v2446_v25 = vld [vmem:[#allocation2 + $0x148] sm:$0xff] }
 0x2ee   : > { %2103 = vst.msk [vmem:[#allocation2 + $0x158] sm:$0xff] %vm2059_vm1, %v1679_v5  ;;  %v2600_v5 = vsel %vm2059_vm1, %v2502_v59, 0.0  ;;  %v2510_v32 = vmax.f32 %v2446_v25, 0.0 }
 0x2ef   : > { %v2589_v47 = vadd.f32 %v2588_v41, %v2587_v43 }
 0x2f1   : > { %v1684_v13 = vpop.xlane.xlu0 %1683  ;;  %v2591_v52 = vadd.f32 %v2590_v45, %v2589_v47  ;;  %v2447_v29 = vld [vmem:[#allocation2 + $0x150] sm:$0xff] }
 0x2f2   : > { %2104 = vst.msk [vmem:[#allocation2 + $0x160] sm:$0xff] %vm2059_vm1, %v1684_v13  ;;  %v2604_v13 = vsel %vm2059_vm1, %v2504_v6, 0.0  ;;  %v2511_v36 = vmax.f32 %v2447_v29, 0.0 }
 0x2f3   : > { %v2593_v56 = vadd.f32 %v2592_v50, %v2591_v52 }
 0x2f4   : > { %v2618_v44 = vsel %vm2059_vm1, %v2511_v36, 0.0 }
 0x2f5   : > { %v1689_v23 = vpop.xlane.xlu1 %1688  ;;  %v2595_v60 = vadd.f32 %v2594_v54, %v2593_v56  ;;  %v2448_v34 = vld [vmem:[#allocation2 + $0x158] sm:$0xff] }
 0x2f6   : > { %2105 = vst.msk [vmem:[#allocation2 + $0x168] sm:$0xff] %vm2059_vm1, %v1689_v23  ;;  %v2608_v23 = vsel %vm2059_vm1, %v2506_v14, 0.0  ;;  %v2512_v41 = vmax.f32 %v2448_v34, 0.0 }
 0x2f7   : > { %v2597_v1 = vadd.f32 %v2596_v58, %v2595_v60 }
 0x2f9   : > { %v1694_v31 = vpop.xlane.xlu0 %1693  ;;  %v2599_v7 = vadd.f32 %v2598_v62, %v2597_v1  ;;  %v2449_v38 = vld [vmem:[#allocation2 + $0x160] sm:$0xff] }
 0x2fa   : > { %2106 = vst.msk [vmem:[#allocation2 + $0x170] sm:$0xff] %vm2059_vm1, %v1694_v31  ;;  %v2612_v31 = vsel %vm2059_vm1, %v2508_v21, 0.0  ;;  %v2513_v45 = vmax.f32 %v2449_v38, 0.0 }
 0x2fb   : > { %v2601_v11 = vadd.f32 %v2600_v5, %v2599_v7 }
 0x2fc   : > { %v2622_v53 = vsel %vm2059_vm1, %v2513_v45, 0.0 }
 0x2fd   : > { %v1699_v40 = vpop.xlane.xlu1 %1698  ;;  %v2603_v15 = vadd.f32 %v2602_v9, %v2601_v11  ;;  %v2450_v43 = vld [vmem:[#allocation2 + $0x168] sm:$0xff] }
 0x2fe   : > { %2107 = vst.msk [vmem:[#allocation2 + $0x178] sm:$0xff] %vm2059_vm1, %v1699_v40  ;;  %v2616_v40 = vsel %vm2059_vm1, %v2510_v32, 0.0  ;;  %v2514_v50 = vmax.f32 %v2450_v43, 0.0 }
 0x2ff   : > { %v2605_v19 = vadd.f32 %v2604_v13, %v2603_v15 }
 0x301   : > { %v1704_v49 = vpop.xlane.xlu0 %1703  ;;  %v2607_v24 = vadd.f32 %v2606_v17, %v2605_v19  ;;  %v2451_v47 = vld [vmem:[#allocation2 + $0x170] sm:$0xff] }
 0x302   : > { %2108 = vst.msk [vmem:[#allocation2 + $0x180] sm:$0xff] %vm2059_vm1, %v1704_v49  ;;  %v2620_v49 = vsel %vm2059_vm1, %v2512_v41, 0.0  ;;  %v2515_v54 = vmax.f32 %v2451_v47, 0.0 }
 0x303   : > { %v2609_v28 = vadd.f32 %v2608_v23, %v2607_v24 }
 0x304   : > { %v2626_v61 = vsel %vm2059_vm1, %v2515_v54, 0.0 }
 0x305   : > { %v1709_v0 = vpop.xlane.xlu1 %1708  ;;  %v2611_v33 = vadd.f32 %v2610_v26, %v2609_v28  ;;  %v2452_v52 = vld [vmem:[#allocation2 + $0x178] sm:$0xff] }
 0x306   : > { %2109 = vst.msk [vmem:[#allocation2 + $0x188] sm:$0xff] %vm2059_vm1, %v1709_v0  ;;  %v2624_v0 = vsel %vm2059_vm1, %v2514_v50, 0.0  ;;  %v2516_v58 = vmax.f32 %v2452_v52, 0.0 }
 0x307   : > { %v2613_v37 = vadd.f32 %v2612_v31, %v2611_v33 }
 0x309   : > { %v1714_v3 = vpop.xlane.xlu0 %1713  ;;  %v2615_v42 = vadd.f32 %v2614_v35, %v2613_v37  ;;  %v2453_v56 = vld [vmem:[#allocation2 + $0x180] sm:$0xff] }
 0x30a   : > { %2110 = vst.msk [vmem:[#allocation2 + $0x190] sm:$0xff] %vm2059_vm1, %v1714_v3  ;;  %v2517_v62 = vmax.f32 %v2453_v56, 0.0  ;;  %v2628_v3 = vsel %vm2059_vm1, %v2516_v58, 0.0 }
 0x30b   : > { %v2617_v46 = vadd.f32 %v2616_v40, %v2615_v42 }
 0x30c   : > { %v2630_v8 = vsel %vm2059_vm1, %v2517_v62, 0.0 }
 0x30d   : > { %v1719_v12 = vpop.xlane.xlu1 %1718  ;;  %v2619_v51 = vadd.f32 %v2618_v44, %v2617_v46  ;;  %v2454_v60 = vld [vmem:[#allocation2 + $0x188] sm:$0xff] }
 0x30e   : > { %2111 = vst.msk [vmem:[#allocation2 + $0x198] sm:$0xff] %vm2059_vm1, %v1719_v12  ;;  %v2518_v5 = vmax.f32 %v2454_v60, 0.0 }
 0x30f   : > { %v2621_v55 = vadd.f32 %v2620_v49, %v2619_v51 }
 0x310   : > { %v2632_v12 = vsel %vm2059_vm1, %v2518_v5, 0.0 }
 0x311   : > { %v1724_v22 = vpop.xlane.xlu0 %1723  ;;  %v2623_v59 = vadd.f32 %v2622_v53, %v2621_v55  ;;  %v2455_v1 = vld [vmem:[#allocation2 + $0x190] sm:$0xff] }
 0x312   : > { %2112 = vst.msk [vmem:[#allocation2 + $0x1a0] sm:$0xff] %vm2059_vm1, %v1724_v22  ;;  %v2519_v9 = vmax.f32 %v2455_v1, 0.0 }
 0x313   : > { %v2625_v63 = vadd.f32 %v2624_v0, %v2623_v59 }
 0x314   : > { %v2634_v16 = vsel %vm2059_vm1, %v2519_v9, 0.0 }
 0x315   : > { %v1729_v30 = vpop.xlane.xlu1 %1728  ;;  %v2627_v6 = vadd.f32 %v2626_v61, %v2625_v63  ;;  %v2456_v7 = vld [vmem:[#allocation2 + $0x198] sm:$0xff] }
 0x316   : > { %2113 = vst.msk [vmem:[#allocation2 + $0x1a8] sm:$0xff] %vm2059_vm1, %v1729_v30  ;;  %v2520_v13 = vmax.f32 %v2456_v7, 0.0 }
 0x317   : > { %v2629_v10 = vadd.f32 %v2628_v3, %v2627_v6 }
 0x318   : > { %v2636_v22 = vsel %vm2059_vm1, %v2520_v13, 0.0 }
 0x319   : > { %v1734_v39 = vpop.xlane.xlu0 %1733  ;;  %v2457_v11 = vld [vmem:[#allocation2 + $0x1a0] sm:$0xff]  ;;  %v2631_v14 = vadd.f32 %v2630_v8, %v2629_v10 }
 0x31a   : > { %2114 = vst.msk [vmem:[#allocation2 + $0x1b0] sm:$0xff] %vm2059_vm1, %v1734_v39  ;;  %v2521_v17 = vmax.f32 %v2457_v11, 0.0 }
 0x31b   : > { %v2633_v18 = vadd.f32 %v2632_v12, %v2631_v14  ;;  %v2533_v14 = vld [vmem:[%s3770_s21] sm:$0x1] }
 0x31c   : > { %v2638_v25 = vsel %vm2059_vm1, %v2521_v17, 0.0 }
 0x31d   : > { %v1739_v48 = vpop.xlane.xlu1 %1738  ;;  %v2458_v15 = vld [vmem:[#allocation2 + $0x1a8] sm:$0xff]  ;;  %v2635_v21 = vadd.f32 %v2634_v16, %v2633_v18 }
 0x31e   : > { %2115 = vst.msk [vmem:[#allocation2 + $0x1b8] sm:$0xff] %vm2059_vm1, %v1739_v48  ;;  %v2522_v23 = vmax.f32 %v2458_v15, 0.0 }
 0x31f   : > { %v2637_v27 = vadd.f32 %v2636_v22, %v2635_v21 }
 0x320   : > { %v2640_v31 = vsel %vm2059_vm1, %v2522_v23, 0.0 }
 0x321   : > { %v1744_v57 = vpop.xlane.xlu0 %1743  ;;  %v2459_v19 = vld [vmem:[#allocation2 + $0x1b0] sm:$0xff]  ;;  %v2639_v33 = vadd.f32 %v2638_v25, %v2637_v27 }
 0x322   : > { %2116 = vst.msk [vmem:[#allocation2 + $0x1c0] sm:$0xff] %vm2059_vm1, %v1744_v57  ;;  %v2523_v26 = vmax.f32 %v2459_v19, 0.0 }
 0x323   : > { %v2641_v38 = vadd.f32 %v2640_v31, %v2639_v33 }
 0x324   : > { %v2642_v35 = vsel %vm2059_vm1, %v2523_v26, 0.0 }
 0x325   : > { %v1749_v2 = vpop.xlane.xlu1 %1748  ;;  %v2460_v24 = vld [vmem:[#allocation2 + $0x1b8] sm:$0xff]  ;;  %v2643_v42 = vadd.f32 %v2642_v35, %v2641_v38 }
 0x326   : > { %2117 = vst.msk [vmem:[#allocation2 + $0x1c8] sm:$0xff] %vm2059_vm1, %v1749_v2  ;;  %v2524_v30 = vmax.f32 %v2460_v24, 0.0 }
 0x328   : > { %v2644_v40 = vsel %vm2059_vm1, %v2524_v30, 0.0 }
 0x329   : > { %v1754_v4 = vpop.xlane.xlu0 %1753  ;;  %v2461_v29 = vld [vmem:[#allocation2 + $0x1c0] sm:$0xff]  ;;  %v2645_v47 = vadd.f32 %v2644_v40, %v2643_v42 }
 0x32a   : > { %2118 = vst.msk [vmem:[#allocation2 + $0x1d0] sm:$0xff] %vm2059_vm1, %v1754_v4  ;;  %v2525_v34 = vmax.f32 %v2461_v29, 0.0 }
 0x32c   : > { %v2646_v44 = vsel %vm2059_vm1, %v2525_v34, 0.0 }
 0x32d   : > { %v1759_v20 = vpop.xlane.xlu1 %1758  ;;  %v2462_v32 = vld [vmem:[#allocation2 + $0x1c8] sm:$0xff]  ;;  %v2647_v50 = vadd.f32 %v2646_v44, %v2645_v47 }
 0x32e   : > { %2119 = vst.msk [vmem:[#allocation2 + $0x1d8] sm:$0xff] %vm2059_vm1, %v1759_v20  ;;  %v2526_v39 = vmax.f32 %v2462_v32, 0.0 }
 0x330   : > { %v2648_v49 = vsel %vm2059_vm1, %v2526_v39, 0.0 }
 0x331   : > { %v1764_v28 = vpop.xlane.xlu0 %1763  ;;  %v2463_v37 = vld [vmem:[#allocation2 + $0x1d0] sm:$0xff]  ;;  %v2649_v55 = vadd.f32 %v2648_v49, %v2647_v50 }
 0x332   : > { %2120 = vst.msk [vmem:[#allocation2 + $0x1e0] sm:$0xff] %vm2059_vm1, %v1764_v28  ;;  %v2527_v43 = vmax.f32 %v2463_v37, 0.0 }
 0x334   : > { %v2650_v52 = vsel %vm2059_vm1, %v2527_v43, 0.0 }
 0x335   : > { %v1769_v36 = vpop.xlane.xlu1 %1768  ;;  %v2464_v41 = vld [vmem:[#allocation2 + $0x1d8] sm:$0xff]  ;;  %v2651_v0 = vadd.f32 %v2650_v52, %v2649_v55 }
 0x336   : > { %2121 = vst.msk [vmem:[#allocation2 + $0x1e8] sm:$0xff] %vm2059_vm1, %v1769_v36  ;;  %v2528_v48 = vmax.f32 %v2464_v41, 0.0 }
 0x338   : > { %v2652_v57 = vsel %vm2059_vm1, %v2528_v48, 0.0 }
 0x339   : > { %v1774_v45 = vpop.xlane.xlu0 %1773  ;;  %v2465_v46 = vld [vmem:[#allocation2 + $0x1e0] sm:$0xff]  ;;  %v2653_v60 = vadd.f32 %v2652_v57, %v2651_v0 }
 0x33a   : > { %2122 = vst.msk [vmem:[#allocation2 + $0x1f0] sm:$0xff] %vm2059_vm1, %v1774_v45  ;;  %v2529_v51 = vmax.f32 %v2465_v46, 0.0 }
 0x33c   : > { %v2654_v58 = vsel %vm2059_vm1, %v2529_v51, 0.0 }
 0x33d   : > { %v1779_v53 = vpop.xlane.xlu1 %1778  ;;  %v2466_v54 = vld [vmem:[#allocation2 + $0x1e8] sm:$0xff]  ;;  %v2655_v63 = vadd.f32 %v2654_v58, %v2653_v60 }
 0x33e   : > { %2123 = vst.msk [vmem:[#allocation2 + $0x1f8] sm:$0xff] %vm2059_vm1, %v1779_v53  ;;  %v2530_v56 = vmax.f32 %v2466_v54, 0.0 }
 0x340   : > { %v2656_v62 = vsel %vm2059_vm1, %v2530_v56, 0.0 }
 0x341   : > { %v2467_v59 = vld [vmem:[#allocation2 + $0x1f0] sm:$0xff]  ;;  %v2657_v3 = vadd.f32 %v2656_v62, %v2655_v63 }
 0x342   : > { %v2531_v61 = vmax.f32 %v2467_v59, 0.0 }
 0x344   : > { %v2658_v1 = vsel %vm2059_vm1, %v2531_v61, 0.0 }
 0x345   : > { %v2468_v2 = vld [vmem:[#allocation2 + $0x1f8] sm:$0xff]  ;;  %v2659_v6 = vadd.f32 %v2658_v1, %v2657_v3 }
 0x346   : > { %v2532_v5 = vmax.f32 %v2468_v2, 0.0 }
 0x348   : > { %v2660_v7 = vsel %vm2059_vm1, %v2532_v5, 0.0 }
 0x349   : > { %v2661_v8 = vadd.f32 %v2660_v7, %v2659_v6 }
 0x34b   : > { %v2662_v9 = vrot.slane %v2661_v8, 4 }
 0x34d   : > { %v2663_v10 = vadd.f32 %v2662_v9, %v2661_v8 }
 0x34f   : > { %v2664_v11 = vrot.slane %v2663_v10, 2 }
 0x351   : > { %v2665_v4 = vadd.f32 %v2664_v11, %v2663_v10 }
 0x353   : > { %v2666_v12 = vrot.slane %v2665_v4, 1 }
 0x355   : > { %v2667_v13 = vadd.f32 %v2666_v12, %v2665_v4 }
 0x357   : > { %2670 = vperm.xlu0 %3057, %v2667_v13  }
 0x360   : > { %v2713_v17 = vpop.xlane.xlu1 %2712 }
 0x3d6   : > { %v2671_v15 = vpop.permute.xlu0 %2670 }
 0x3d7   : > { %v2673_v16 = vadd.f32 %v2671_v15, %v2533_v14 }
 0x3d9   : > { %2674 = vst [vmem:[%s3770_s21] sm:$0x1] %v2673_v16 }
 0x3e0   : > { %v2682_v18 = vld [vmem:[%s3770_s21] sm:$0x1] }
 0x3e1   : > { %v2714_v19 = vadd.f32 %v2713_v17, %v2682_v18 }
 0x3e3   : > { %2715 = vst [vmem:[%s3770_s21] sm:$0x1] %v2714_v19 }
 0x3e4   : > { %3131 = shalt.err (!%p3128_p2)
}
 0x3e5   : > { %s3132_s3 = scalar_lea.hbm %s3855_s27, 16  ;;  %s3136_s18 = scalar_lea.hbm %s3907_s2, 32 }
 0x3e6   : > { %p3133_p9 = scmp.ne.s32.totalorder %s3855_s27, %s3132_s3  ;;  %p3137_p6 = scmp.lt.u32.totalorder %s3855_s27, %s3907_s2 }
 0x3e7   : > { %p3138_p13 = scmp.lt.u32.totalorder %s3136_s18, %s3132_s3  ;;  %p3140_p8 = scmp.lt.u32.totalorder %s3132_s3, %s3855_s27 }
 0x3e8   : > { %p3134_p11 = pnand %p3133_p9, %p3920_p0 }
 0x3e9   : > { %p3139_p5 = por %p3138_p13, %p3137_p6 }
 0x3ea   : > { %p3135_p3 = pneg %p3134_p11 }
 0x3eb   : > { %p3141_p7 = por %p3140_p8, %p3139_p5 }
 0x3ed   : > { %p3142_p4 = pnand %p3141_p7, %p3135_p3 }
 0x3ef   : > { %3145 = shalt.err (!%p3142_p4)
}
 0x3f0   : > { %2991 = dma.vmem_to_hbm [thread:$0]  (%p3920_p0), %s3857_s19, 16, %s3855_s27, %s2717_s28  }
 0x3f1 PF: > { %s2741_s5 = sand.u32 1, %s3184_s9   ;;  %p3921_p10 = scmp.ne.s32.totalorder %s3913_s24, 0 }
 0x3f2   : > { %p3922_p12 = scmp.ge.s32.totalorder %s3204_s14, 2  ;;  %s2742_s16 = scalar_lea.sflag [#allocation6], %s2741_s5 }
 0x3f4   : > { %p3001_p1 = pnand %p3922_p12, %p3921_p10 }
 0x3f6   : > { %3179 = dma.done.wait (!%p3001_p1), %s2742_s16, 16  }
 0x3f7   : > { %3181 = vsyncadd (!%p3001_p1), %s2742_s16, 4294967280  ;;  %s21_s14 = sadd.s32 1, %s3204_s14   ;;  %s3923_s9 = smov %s3188_s10 }
 0x3f8   : > { %p18_p2 = scmp.ge.s32.totalorder %s21_s14, 4   ;;  %s3924_s10 = smov %s3192_s11 }
 0x3f9   : > { %s3925_s11 = smov %s3283_s23  ;;  %s3926_s12 = smov %s3200_s13 }
 0x3fa   : > { %s3927_s13 = smov %s3929_s17  ;;  %20 = sbr.rel (!%p18_p2) target bundleno = 8 (0x8), region = 117 }
 0x401   :  { %2746 = vsyncpa [#allocation5], 1 }
 0x402   :  { %2748 = vsyncpa [#allocation5 + $0x1], 1 }
 0x403   :  { %2749 = vsyncpa [#allocation8], 1 }
 0x404   :  { %2751 = vsyncpa [#allocation8 + $0x1], 1 }
 0x405   :  { %2752 = vsyncpa [#allocation6], 1 }
 0x406   :  { %2754 = vsyncpa [#allocation6 + $0x1], 1 }

</bundles_post_ra>
